<compile_context>
chip_gen: v6e
topology: v6e:2x2x1
jax: 0.10.0
libtpu: 0.0.40
codegen_flags: <defaults>
</compile_context>

<pallas_src>
import functools

import jax
import jax.numpy as jnp
from jax.experimental import pallas as pl
from jax.experimental.pallas import tpu as pltpu


# ----------------------------------------------------------------------------
# Positional embedding — reproduces the (quirky) PyTorch code exactly:
#   result[i][j] = sin( i / freq**(j/d)          ) if j even
#                = sin( cos(i / freq**((j-1)/d)) ) if j odd   (sin wraps the ternary!)
# ----------------------------------------------------------------------------
def get_positional_embeddings(seq_len, d, freq=10000.0):
    i = jnp.arange(seq_len, dtype=jnp.float32)[:, None]
    j = jnp.arange(d, dtype=jnp.float32)[None, :]
    even = (jnp.arange(d) % 2 == 0)[None, :]
    arg_even = i / freq ** (j / d)
    arg_odd = jnp.cos(i / freq ** ((j - 1.0) / d))
    return jnp.sin(jnp.where(even, arg_even, arg_odd)).astype(jnp.float32)


# ----------------------------------------------------------------------------
# LayerNorm over a whole (S+1, H) slab per sample (PyTorch LayerNorm((S+1, H)))
# operating on the flat (batch*S1, H) activation with static per-sample slices.
# ----------------------------------------------------------------------------
def _layer_norm_per_sample(y, w, b, batch, s1, eps=1e-5):
    outs = []
    for bb in range(batch):
        yb = y[bb * s1:(bb + 1) * s1, :]                 # (S1, H) static slice
        m = jnp.mean(yb)
        v = jnp.mean((yb - m) ** 2)
        outs.append((yb - m) * jax.lax.rsqrt(v + eps) * w + b)
    return outs[0] if batch == 1 else jnp.concatenate(outs, axis=0)


# ----------------------------------------------------------------------------
# Fused forward kernel: mapper + class token/pos-emb + all encoder layers + head.
# One grid step processes `batch` samples (a batch shard).
# ----------------------------------------------------------------------------
def fused_forward_kernel(
        x_ref,                        # (batch*S, Din)   flattened input rows (this shard)
        map_wt_ref, map_b_ref,        # (Din, H), (1, H)
        cls_ref, pos_ref,             # (1, H), (S1, H)
        w_in_t_ref, b_in_ref,         # (L, H, 3H), (L, 1, 3H)
        w_out_t_ref, b_out_ref,       # (L, H, H),  (L, 1, H)
        ln1_w_ref, ln1_b_ref,         # (L, S1, H) x2
        ffn_wt_ref, ffn_b_ref,        # (L, H, H),  (L, 1, H)
        ln2_w_ref, ln2_b_ref,         # (L, S1, H) x2
        head_wt_ref, head_b_ref,      # (H, O), (1, O)
        o_ref,                        # (batch, 1, O)
        *, batch, seq_len, hidden, num_heads, num_layers):
    s1 = seq_len + 1
    n_rows = batch * s1
    dh = hidden // num_heads
    scale = 1.0 / (dh ** 0.5)

    # ---- 1) linear mapper: one GEMM over every token row of this shard ----
    mapped = (jnp.dot(x_ref[...], map_wt_ref[...], preferred_element_type=jnp.float32)
              + map_b_ref[...])                                       # (batch*S, H)

    # ---- 2) prepend class token + positional embedding, flat (batch*S1, H) layout ----
    pos = pos_ref[...]                                                # (S1, H)
    cls_row = cls_ref[...] + pos[0:1, :]                              # (1, H)
    pos_tok = pos[1:, :]                                              # (S, H)
    pieces = []
    for bb in range(batch):
        pieces.append(cls_row)
        pieces.append(mapped[bb * seq_len:(bb + 1) * seq_len, :] + pos_tok)
    h = jnp.concatenate(pieces, axis=0)                               # (batch*S1, H)

    # ---- 3) encoder stack: static loop over layers, all weights stay in VMEM ----
    for l in range(num_layers):
        qkv = (jnp.dot(h, w_in_t_ref[l], preferred_element_type=jnp.float32)
               + b_in_ref[l])                                         # (n_rows, 3H)
        q = qkv[:, :hidden].reshape(batch, s1, hidden)
        k = qkv[:, hidden:2 * hidden].reshape(batch, s1, hidden)
        v = qkv[:, 2 * hidden:].reshape(batch, s1, hidden)

        heads = []
        for hh in range(num_heads):        # static unroll over heads, batched over batch
            sl = slice(hh * dh, (hh + 1) * dh)
            qh, kh, vh = q[..., sl], k[..., sl], v[..., sl]
            s = jnp.einsum("bqd,bkd->bqk", qh, kh,
                           preferred_element_type=jnp.float32) * scale
            s = s - jnp.max(s, axis=-1, keepdims=True)
            p = jnp.exp(s)
            # exact reciprocal (approx=True would risk the 1e-4 correctness tolerance)
            p = p * pl.reciprocal(jnp.sum(p, axis=-1, keepdims=True), approx=False)
            heads.append(jnp.einsum("bqk,bkd->bqd", p, vh,
                                    preferred_element_type=jnp.float32))
        attn = jnp.concatenate(heads, axis=-1).reshape(n_rows, hidden)
        attn = (jnp.dot(attn, w_out_t_ref[l], preferred_element_type=jnp.float32)
                + b_out_ref[l])

        out1 = _layer_norm_per_sample(attn + h, ln1_w_ref[l], ln1_b_ref[l], batch, s1)
        ffn = jnp.maximum(
            jnp.dot(out1, ffn_wt_ref[l], preferred_element_type=jnp.float32) + ffn_b_ref[l],
            0.0)
        h = _layer_norm_per_sample(out1 + ffn, ln2_w_ref[l], ln2_b_ref[l], batch, s1)
        # TODO(synk): dropout layers are identity in eval mode (and the module's
        # `self.dropout(enc_out)` result is discarded), so dropout is not implemented.

    # ---- 4) classifier head on the class-token rows (still resident in VMEM) ----
    if batch == 1:
        cls_rows = h[0:1, :]
    else:
        cls_rows = jnp.concatenate([h[bb * s1:bb * s1 + 1, :] for bb in range(batch)],
                                   axis=0)                            # (batch, H)
    out = (jnp.dot(cls_rows, head_wt_ref[...], preferred_element_type=jnp.float32)
           + head_b_ref[...])                                         # (batch, O)
    o_ref[...] = out[:, None, :]


# ----------------------------------------------------------------------------
# Wrapper: pre-transpose / stack weights once, flatten batch, one pallas_call.
# ----------------------------------------------------------------------------
def action_transformer_forward(params, x, *, num_heads, seq_length, hidden,
                               batch_shards=None):
    B, S, Din = x.shape
    S1 = seq_length + 1
    L = len(params["layers"])
    O = params["head_w"].shape[0]

    # One "parallel" grid axis over batch shards so v7x's 2 TensorCores both work;
    # near no-op on v5e/v6e. Fall back to a single shard if the row block misaligns.
    if batch_shards is None:
        batch_shards = 2 if (B % 2 == 0 and ((B // 2) * S) % 8 == 0) else 1
    B_sh = B // batch_shards

    # Pre-transpose every Linear weight once to (in, out) layout (no in-kernel .T)
    # and stack per-layer weights along a leading layer axis.
    layers = params["layers"]
    map_wt = params["map_w"].T                             # (Din, H)
    head_wt = params["head_w"].T                           # (H, O)
    w_in_t = jnp.stack([l["w_in"].T for l in layers])      # (L, H, 3H)
    b_in = jnp.stack([l["b_in"] for l in layers])          # (L, 1, 3H)
    w_out_t = jnp.stack([l["w_out"].T for l in layers])    # (L, H, H)
    b_out = jnp.stack([l["b_out"] for l in layers])        # (L, 1, H)
    ln1_w = jnp.stack([l["ln1_w"] for l in layers])        # (L, S1, H)
    ln1_b = jnp.stack([l["ln1_b"] for l in layers])
    ffn_wt = jnp.stack([l["ffn_w"].T for l in layers])     # (L, H, H)
    ffn_b = jnp.stack([l["ffn_b"] for l in layers])        # (L, 1, H)
    ln2_w = jnp.stack([l["ln2_w"] for l in layers])
    ln2_b = jnp.stack([l["ln2_b"] for l in layers])

    pos = get_positional_embeddings(S1, hidden)            # (S1, H)
    x2 = x.reshape(B * S, Din)                              # flatten batch -> GEMM M rows

    args = (x2,
            map_wt, params["map_b"], params["class_token"], pos,
            w_in_t, b_in, w_out_t, b_out,
            ln1_w, ln1_b, ffn_wt, ffn_b, ln2_w, ln2_b,
            head_wt, params["head_b"])

    def full_spec(a):
        nd = a.ndim
        return pl.BlockSpec(a.shape, lambda i, _nd=nd: (0,) * _nd)

    in_specs = ([pl.BlockSpec((B_sh * S, Din), lambda i: (i, 0))]
                + [full_spec(a) for a in args[1:]])

    kernel = functools.partial(fused_forward_kernel,
                               batch=B_sh, seq_len=S, hidden=hidden,
                               num_heads=num_heads, num_layers=L)

    out3 = pl.pallas_call(
        kernel,
        out_shape=jax.ShapeDtypeStruct((B, 1, O), jnp.float32),
        grid=(batch_shards,),
        in_specs=in_specs,
        out_specs=pl.BlockSpec((B_sh, 1, O), lambda i: (i, 0, 0)),
        compiler_params=pltpu.CompilerParams(dimension_semantics=("parallel",)),
    )(*args)
    return out3.reshape(B, O)


# ----------------------------------------------------------------------------
# Parameter init (PyTorch (out, in) Linear layout; transposed once in the wrapper)
# ----------------------------------------------------------------------------
def init_params(key, *, input_dim, hidden, seq_length, num_layers, out_dim):
    S1 = seq_length + 1
    keys = iter(jax.random.split(key, 8 + num_layers * 8))
    nrm = lambda k, shape, s=0.05: (s * jax.random.normal(k, shape)).astype(jnp.float32)

    params = {
        "map_w": nrm(next(keys), (hidden, input_dim)),
        "map_b": nrm(next(keys), (1, hidden)),
        "class_token": jax.random.uniform(next(keys), (1, hidden), dtype=jnp.float32),
        "head_w": nrm(next(keys), (out_dim, hidden)),
        "head_b": nrm(next(keys), (1, out_dim)),
        "layers": [],
    }
    for _ in range(num_layers):
        layer = {
            "w_in": nrm(next(keys), (3 * hidden, hidden)),
            "b_in": nrm(next(keys), (1, 3 * hidden)),
            "w_out": nrm(next(keys), (hidden, hidden)),
            "b_out": nrm(next(keys), (1, hidden)),
            "ln1_w": jnp.ones((S1, hidden), jnp.float32),
            "ln1_b": jnp.zeros((S1, hidden), jnp.float32),
            "ffn_w": nrm(next(keys), (hidden, hidden)),
            "ffn_b": nrm(next(keys), (1, hidden)),
            "ln2_w": jnp.ones((S1, hidden), jnp.float32),
            "ln2_b": jnp.zeros((S1, hidden), jnp.float32),
        }
        params["layers"].append(layer)
    return params


# ----------------------------------------------------------------------------
# Pure-JAX reference (mirrors the PyTorch forward) for correctness checking
# ----------------------------------------------------------------------------
def reference_forward(params, x, *, num_heads, seq_length, hidden):
    B = x.shape[0]
    tokens = jnp.einsum("bsd,hd->bsh", x, params["map_w"]) + params["map_b"][0]
    cls = jnp.broadcast_to(params["class_token"][None], (B, 1, hidden))
    h = jnp.concatenate([cls, tokens], axis=1) + get_positional_embeddings(seq_length + 1, hidden)[None]

    def ln(y, w, b, eps=1e-5):
        m = jnp.mean(y, axis=(1, 2), keepdims=True)
        v = jnp.mean((y - m) ** 2, axis=(1, 2), keepdims=True)
        return (y - m) / jnp.sqrt(v + eps) * w[None] + b[None]

    for layer in params["layers"]:
        E = hidden
        dh = E // num_heads
        qkv = jnp.einsum("bse,fe->bsf", h, layer["w_in"]) + layer["b_in"][0]
        q, k, v = qkv[..., :E], qkv[..., E:2 * E], qkv[..., 2 * E:]
        split = lambda t: t.reshape(B, -1, num_heads, dh).transpose(0, 2, 1, 3)
        qh, kh, vh = split(q), split(k), split(v)
        s = jnp.einsum("bhqd,bhkd->bhqk", qh, kh) / (dh ** 0.5)
        p = jax.nn.softmax(s, axis=-1)
        a = jnp.einsum("bhqk,bhkd->bhqd", p, vh).transpose(0, 2, 1, 3).reshape(B, -1, E)
        a = jnp.einsum("bse,fe->bsf", a, layer["w_out"]) + layer["b_out"][0]
        out1 = ln(a + h, layer["ln1_w"], layer["ln1_b"])
        ffn = jnp.maximum(jnp.einsum("bse,fe->bsf", out1, layer["ffn_w"]) + layer["ffn_b"][0], 0.0)
        h = ln(out1 + ffn, layer["ln2_w"], layer["ln2_b"])
    return jnp.einsum("be,oe->bo", h[:, 0], params["head_w"]) + params["head_b"][0]


if __name__ == "__main__":
    B = 2
    INPUT_DIM = 12
    HIDDEN = 32
    SEQ_LEN = 8
    NUM_HEADS = 4
    NUM_LAYERS = 2
    OUT_DIM = 10

    key = jax.random.PRNGKey(0)
    kx, kp = jax.random.split(key)
    x = jax.random.normal(kx, (B, SEQ_LEN, INPUT_DIM), dtype=jnp.float32)
    params = init_params(kp, input_dim=INPUT_DIM, hidden=HIDDEN,
                         seq_length=SEQ_LEN, num_layers=NUM_LAYERS, out_dim=OUT_DIM)

    out = action_transformer_forward(params, x, num_heads=NUM_HEADS,
                                     seq_length=SEQ_LEN, hidden=HIDDEN)
    out = jax.block_until_ready(out)

    ref = jax.block_until_ready(
        reference_forward(params, x, num_heads=NUM_HEADS, seq_length=SEQ_LEN, hidden=HIDDEN))
    assert out.shape == (B, OUT_DIM)
    assert jnp.allclose(out, ref, atol=1e-4, rtol=1e-4), (out, ref)

    print("KERNEL_OK")
</pallas_src>

<mosaic_0001>
module attributes {stable_mosaic.version = 11 : i64} {
  func.func @fused_forward_kernel(%arg0: i32, %arg1: memref<8x12xf32, #tpu.memory_space<vmem>>, %arg2: memref<12x32xf32, #tpu.memory_space<vmem>>, %arg3: memref<1x32xf32, #tpu.memory_space<vmem>>, %arg4: memref<1x32xf32, #tpu.memory_space<vmem>>, %arg5: memref<9x32xf32, #tpu.memory_space<vmem>>, %arg6: memref<2x32x96xf32, #tpu.memory_space<vmem>>, %arg7: memref<2x1x96xf32, #tpu.memory_space<vmem>>, %arg8: memref<2x32x32xf32, #tpu.memory_space<vmem>>, %arg9: memref<2x1x32xf32, #tpu.memory_space<vmem>>, %arg10: memref<2x9x32xf32, #tpu.memory_space<vmem>>, %arg11: memref<2x9x32xf32, #tpu.memory_space<vmem>>, %arg12: memref<2x32x32xf32, #tpu.memory_space<vmem>>, %arg13: memref<2x1x32xf32, #tpu.memory_space<vmem>>, %arg14: memref<2x9x32xf32, #tpu.memory_space<vmem>>, %arg15: memref<2x9x32xf32, #tpu.memory_space<vmem>>, %arg16: memref<32x10xf32, #tpu.memory_space<vmem>>, %arg17: memref<1x10xf32, #tpu.memory_space<vmem>>, %arg18: memref<1x1x10xf32, #tpu.memory_space<vmem>>) attributes {dimension_semantics = [#tpu.dimension_semantics<parallel>], iteration_bounds = array<i64: 2>, scalar_prefetch = 0 : i64, scratch_operands = 0 : i64, tpu.core_type = #tpu.core_type<tc>, window_params = [{transform_indices = @transform_0, window_bounds = array<i64: 8, 12>}, {pipeline_mode = #tpu.pipeline_mode<synchronous>, transform_indices = @transform_1, window_bounds = array<i64: 12, 32>}, {pipeline_mode = #tpu.pipeline_mode<synchronous>, transform_indices = @transform_2, window_bounds = array<i64: 1, 32>}, {pipeline_mode = #tpu.pipeline_mode<synchronous>, transform_indices = @transform_3, window_bounds = array<i64: 1, 32>}, {pipeline_mode = #tpu.pipeline_mode<synchronous>, transform_indices = @transform_4, window_bounds = array<i64: 9, 32>}, {pipeline_mode = #tpu.pipeline_mode<synchronous>, transform_indices = @transform_5, window_bounds = array<i64: 2, 32, 96>}, {pipeline_mode = #tpu.pipeline_mode<synchronous>, transform_indices = @transform_6, window_bounds = array<i64: 2, 1, 96>}, {pipeline_mode = #tpu.pipeline_mode<synchronous>, transform_indices = @transform_7, window_bounds = array<i64: 2, 32, 32>}, {pipeline_mode = #tpu.pipeline_mode<synchronous>, transform_indices = @transform_8, window_bounds = array<i64: 2, 1, 32>}, {pipeline_mode = #tpu.pipeline_mode<synchronous>, transform_indices = @transform_9, window_bounds = array<i64: 2, 9, 32>}, {pipeline_mode = #tpu.pipeline_mode<synchronous>, transform_indices = @transform_10, window_bounds = array<i64: 2, 9, 32>}, {pipeline_mode = #tpu.pipeline_mode<synchronous>, transform_indices = @transform_11, window_bounds = array<i64: 2, 32, 32>}, {pipeline_mode = #tpu.pipeline_mode<synchronous>, transform_indices = @transform_12, window_bounds = array<i64: 2, 1, 32>}, {pipeline_mode = #tpu.pipeline_mode<synchronous>, transform_indices = @transform_13, window_bounds = array<i64: 2, 9, 32>}, {pipeline_mode = #tpu.pipeline_mode<synchronous>, transform_indices = @transform_14, window_bounds = array<i64: 2, 9, 32>}, {pipeline_mode = #tpu.pipeline_mode<synchronous>, transform_indices = @transform_15, window_bounds = array<i64: 32, 10>}, {pipeline_mode = #tpu.pipeline_mode<synchronous>, transform_indices = @transform_16, window_bounds = array<i64: 1, 10>}, {transform_indices = @transform_17, window_bounds = array<i64: 1, 1, 10>}]} {
    %c0 = arith.constant 0 : index
    %c0_0 = arith.constant 0 : index
    %0 = vector.load %arg1[%c0, %c0_0] : memref<8x12xf32, #tpu.memory_space<vmem>>, vector<8x12xf32>
    %c0_1 = arith.constant 0 : index
    %c0_2 = arith.constant 0 : index
    %1 = vector.load %arg2[%c0_1, %c0_2] : memref<12x32xf32, #tpu.memory_space<vmem>>, vector<12x32xf32>
    %cst = arith.constant dense<0.000000e+00> : vector<8x32xf32>
    %2 = tpu.matmul %0, %1, %cst {dimension_numbers = #tpu.dot_dimension_numbers<[1], [0], [0], [1], [0, 0, 1, 1], [], []>} : vector<8x12xf32>, vector<12x32xf32>, vector<8x32xf32> -> vector<8x32xf32>
    %c0_3 = arith.constant 0 : index
    %c0_4 = arith.constant 0 : index
    %3 = vector.load %arg3[%c0_3, %c0_4] : memref<1x32xf32, #tpu.memory_space<vmem>>, vector<1x32xf32>
    %4 = vector.broadcast %3 : vector<1x32xf32> to vector<8x32xf32>
    %5 = arith.addf %2, %4 : vector<8x32xf32>
    %c0_5 = arith.constant 0 : index
    %c0_6 = arith.constant 0 : index
    %6 = vector.load %arg5[%c0_5, %c0_6] : memref<9x32xf32, #tpu.memory_space<vmem>>, vector<9x32xf32>
    %c0_7 = arith.constant 0 : index
    %c0_8 = arith.constant 0 : index
    %7 = vector.load %arg4[%c0_7, %c0_8] : memref<1x32xf32, #tpu.memory_space<vmem>>, vector<1x32xf32>
    %8 = vector.extract_strided_slice %6 {offsets = [0, 0], sizes = [1, 32], strides = [1, 1]} : vector<9x32xf32> to vector<1x32xf32>
    %9 = arith.addf %7, %8 : vector<1x32xf32>
    %10 = vector.extract_strided_slice %6 {offsets = [1, 0], sizes = [8, 32], strides = [1, 1]} : vector<9x32xf32> to vector<8x32xf32>
    %11 = arith.addf %5, %10 : vector<8x32xf32>
    %12 = tpu.concatenate %9, %11 in 0 : vector<1x32xf32>, vector<8x32xf32> -> vector<9x32xf32>
    %c0_9 = arith.constant 0 : index
    %c0_10 = arith.constant 0 : index
    %c0_11 = arith.constant 0 : index
    %13 = vector.load %arg6[%c0_9, %c0_10, %c0_11] : memref<2x32x96xf32, #tpu.memory_space<vmem>>, vector<1x32x96xf32>
    %14 = vector.shape_cast %13 : vector<1x32x96xf32> to vector<32x96xf32>
    %cst_12 = arith.constant dense<0.000000e+00> : vector<9x96xf32>
    %15 = tpu.matmul %12, %14, %cst_12 {dimension_numbers = #tpu.dot_dimension_numbers<[1], [0], [0], [1], [0, 0, 1, 1], [], []>} : vector<9x32xf32>, vector<32x96xf32>, vector<9x96xf32> -> vector<9x96xf32>
    %c0_13 = arith.constant 0 : index
    %c0_14 = arith.constant 0 : index
    %c0_15 = arith.constant 0 : index
    %16 = vector.load %arg7[%c0_13, %c0_14, %c0_15] : memref<2x1x96xf32, #tpu.memory_space<vmem>>, vector<1x1x96xf32>
    %17 = vector.shape_cast %16 : vector<1x1x96xf32> to vector<1x96xf32>
    %18 = vector.broadcast %17 : vector<1x96xf32> to vector<9x96xf32>
    %19 = arith.addf %15, %18 : vector<9x96xf32>
    %20 = vector.extract_strided_slice %19 {offsets = [0, 0], sizes = [9, 32], strides = [1, 1]} : vector<9x96xf32> to vector<9x32xf32>
    %21 = vector.shape_cast %20 : vector<9x32xf32> to vector<1x9x32xf32>
    %22 = vector.extract_strided_slice %19 {offsets = [0, 32], sizes = [9, 32], strides = [1, 1]} : vector<9x96xf32> to vector<9x32xf32>
    %23 = vector.shape_cast %22 : vector<9x32xf32> to vector<1x9x32xf32>
    %24 = vector.extract_strided_slice %19 {offsets = [0, 64], sizes = [9, 32], strides = [1, 1]} : vector<9x96xf32> to vector<9x32xf32>
    %25 = vector.shape_cast %24 : vector<9x32xf32> to vector<1x9x32xf32>
    %26 = vector.extract_strided_slice %21 {offsets = [0, 0, 0], sizes = [1, 9, 8], strides = [1, 1, 1]} : vector<1x9x32xf32> to vector<1x9x8xf32>
    %27 = vector.extract_strided_slice %23 {offsets = [0, 0, 0], sizes = [1, 9, 8], strides = [1, 1, 1]} : vector<1x9x32xf32> to vector<1x9x8xf32>
    %28 = vector.extract_strided_slice %25 {offsets = [0, 0, 0], sizes = [1, 9, 8], strides = [1, 1, 1]} : vector<1x9x32xf32> to vector<1x9x8xf32>
    "tpu.trace_start"() <{level = 10 : i32, message = "bqd,bkd->bqk"}> : () -> ()
    %cst_16 = arith.constant dense<0.000000e+00> : vector<1x9x9xf32>
    %29 = tpu.matmul %26, %27, %cst_16 {dimension_numbers = #tpu.dot_dimension_numbers<[2], [2], [1], [1], [0, 0, 0, 1, 1, 1], [0], [0]>} : vector<1x9x8xf32>, vector<1x9x8xf32>, vector<1x9x9xf32> -> vector<1x9x9xf32>
    "tpu.trace_stop"() : () -> ()
    %cst_17 = arith.constant 0.353553385 : f32
    %30 = vector.broadcast %cst_17 : f32 to vector<1x9x9xf32>
    %31 = arith.mulf %29, %30 : vector<1x9x9xf32>
    %cst_18 = arith.constant dense<0xFF800000> : vector<1x9xf32>
    %32 = vector.multi_reduction <maximumf>, %31, %cst_18 [2] : vector<1x9x9xf32> to vector<1x9xf32>
    %33 = vector.shape_cast %32 : vector<1x9xf32> to vector<1x9x1xf32>
    %34 = vector.broadcast %33 : vector<1x9x1xf32> to vector<1x9x9xf32>
    %35 = arith.subf %31, %34 : vector<1x9x9xf32>
    %36 = math.exp %35 : vector<1x9x9xf32>
    %cst_19 = arith.constant dense<0.000000e+00> : vector<1x9xf32>
    %37 = vector.multi_reduction <add>, %36, %cst_19 [2] : vector<1x9x9xf32> to vector<1x9xf32>
    %38 = vector.shape_cast %37 : vector<1x9xf32> to vector<1x9x1xf32>
    %39 = tpu.reciprocal %38 : vector<1x9x1xf32> -> vector<1x9x1xf32>
    %40 = vector.broadcast %39 : vector<1x9x1xf32> to vector<1x9x9xf32>
    %41 = arith.mulf %36, %40 : vector<1x9x9xf32>
    "tpu.trace_start"() <{level = 10 : i32, message = "bqk,bkd->bqd"}> : () -> ()
    %cst_20 = arith.constant dense<0.000000e+00> : vector<1x9x8xf32>
    %42 = tpu.matmul %41, %28, %cst_20 {dimension_numbers = #tpu.dot_dimension_numbers<[2], [1], [1], [2], [0, 0, 0, 1, 1, 2], [0], [0]>} : vector<1x9x9xf32>, vector<1x9x8xf32>, vector<1x9x8xf32> -> vector<1x9x8xf32>
    "tpu.trace_stop"() : () -> ()
    %43 = vector.extract_strided_slice %21 {offsets = [0, 0, 8], sizes = [1, 9, 8], strides = [1, 1, 1]} : vector<1x9x32xf32> to vector<1x9x8xf32>
    %44 = vector.extract_strided_slice %23 {offsets = [0, 0, 8], sizes = [1, 9, 8], strides = [1, 1, 1]} : vector<1x9x32xf32> to vector<1x9x8xf32>
    %45 = vector.extract_strided_slice %25 {offsets = [0, 0, 8], sizes = [1, 9, 8], strides = [1, 1, 1]} : vector<1x9x32xf32> to vector<1x9x8xf32>
    "tpu.trace_start"() <{level = 10 : i32, message = "bqd,bkd->bqk"}> : () -> ()
    %cst_21 = arith.constant dense<0.000000e+00> : vector<1x9x9xf32>
    %46 = tpu.matmul %43, %44, %cst_21 {dimension_numbers = #tpu.dot_dimension_numbers<[2], [2], [1], [1], [0, 0, 0, 1, 1, 1], [0], [0]>} : vector<1x9x8xf32>, vector<1x9x8xf32>, vector<1x9x9xf32> -> vector<1x9x9xf32>
    "tpu.trace_stop"() : () -> ()
    %cst_22 = arith.constant 0.353553385 : f32
    %47 = vector.broadcast %cst_22 : f32 to vector<1x9x9xf32>
    %48 = arith.mulf %46, %47 : vector<1x9x9xf32>
    %cst_23 = arith.constant dense<0xFF800000> : vector<1x9xf32>
    %49 = vector.multi_reduction <maximumf>, %48, %cst_23 [2] : vector<1x9x9xf32> to vector<1x9xf32>
    %50 = vector.shape_cast %49 : vector<1x9xf32> to vector<1x9x1xf32>
    %51 = vector.broadcast %50 : vector<1x9x1xf32> to vector<1x9x9xf32>
    %52 = arith.subf %48, %51 : vector<1x9x9xf32>
    %53 = math.exp %52 : vector<1x9x9xf32>
    %cst_24 = arith.constant dense<0.000000e+00> : vector<1x9xf32>
    %54 = vector.multi_reduction <add>, %53, %cst_24 [2] : vector<1x9x9xf32> to vector<1x9xf32>
    %55 = vector.shape_cast %54 : vector<1x9xf32> to vector<1x9x1xf32>
    %56 = tpu.reciprocal %55 : vector<1x9x1xf32> -> vector<1x9x1xf32>
    %57 = vector.broadcast %56 : vector<1x9x1xf32> to vector<1x9x9xf32>
    %58 = arith.mulf %53, %57 : vector<1x9x9xf32>
    "tpu.trace_start"() <{level = 10 : i32, message = "bqk,bkd->bqd"}> : () -> ()
    %cst_25 = arith.constant dense<0.000000e+00> : vector<1x9x8xf32>
    %59 = tpu.matmul %58, %45, %cst_25 {dimension_numbers = #tpu.dot_dimension_numbers<[2], [1], [1], [2], [0, 0, 0, 1, 1, 2], [0], [0]>} : vector<1x9x9xf32>, vector<1x9x8xf32>, vector<1x9x8xf32> -> vector<1x9x8xf32>
    "tpu.trace_stop"() : () -> ()
    %60 = vector.extract_strided_slice %21 {offsets = [0, 0, 16], sizes = [1, 9, 8], strides = [1, 1, 1]} : vector<1x9x32xf32> to vector<1x9x8xf32>
    %61 = vector.extract_strided_slice %23 {offsets = [0, 0, 16], sizes = [1, 9, 8], strides = [1, 1, 1]} : vector<1x9x32xf32> to vector<1x9x8xf32>
    %62 = vector.extract_strided_slice %25 {offsets = [0, 0, 16], sizes = [1, 9, 8], strides = [1, 1, 1]} : vector<1x9x32xf32> to vector<1x9x8xf32>
    "tpu.trace_start"() <{level = 10 : i32, message = "bqd,bkd->bqk"}> : () -> ()
    %cst_26 = arith.constant dense<0.000000e+00> : vector<1x9x9xf32>
    %63 = tpu.matmul %60, %61, %cst_26 {dimension_numbers = #tpu.dot_dimension_numbers<[2], [2], [1], [1], [0, 0, 0, 1, 1, 1], [0], [0]>} : vector<1x9x8xf32>, vector<1x9x8xf32>, vector<1x9x9xf32> -> vector<1x9x9xf32>
    "tpu.trace_stop"() : () -> ()
    %cst_27 = arith.constant 0.353553385 : f32
    %64 = vector.broadcast %cst_27 : f32 to vector<1x9x9xf32>
    %65 = arith.mulf %63, %64 : vector<1x9x9xf32>
    %cst_28 = arith.constant dense<0xFF800000> : vector<1x9xf32>
    %66 = vector.multi_reduction <maximumf>, %65, %cst_28 [2] : vector<1x9x9xf32> to vector<1x9xf32>
    %67 = vector.shape_cast %66 : vector<1x9xf32> to vector<1x9x1xf32>
    %68 = vector.broadcast %67 : vector<1x9x1xf32> to vector<1x9x9xf32>
    %69 = arith.subf %65, %68 : vector<1x9x9xf32>
    %70 = math.exp %69 : vector<1x9x9xf32>
    %cst_29 = arith.constant dense<0.000000e+00> : vector<1x9xf32>
    %71 = vector.multi_reduction <add>, %70, %cst_29 [2] : vector<1x9x9xf32> to vector<1x9xf32>
    %72 = vector.shape_cast %71 : vector<1x9xf32> to vector<1x9x1xf32>
    %73 = tpu.reciprocal %72 : vector<1x9x1xf32> -> vector<1x9x1xf32>
    %74 = vector.broadcast %73 : vector<1x9x1xf32> to vector<1x9x9xf32>
    %75 = arith.mulf %70, %74 : vector<1x9x9xf32>
    "tpu.trace_start"() <{level = 10 : i32, message = "bqk,bkd->bqd"}> : () -> ()
    %cst_30 = arith.constant dense<0.000000e+00> : vector<1x9x8xf32>
    %76 = tpu.matmul %75, %62, %cst_30 {dimension_numbers = #tpu.dot_dimension_numbers<[2], [1], [1], [2], [0, 0, 0, 1, 1, 2], [0], [0]>} : vector<1x9x9xf32>, vector<1x9x8xf32>, vector<1x9x8xf32> -> vector<1x9x8xf32>
    "tpu.trace_stop"() : () -> ()
    %77 = vector.extract_strided_slice %21 {offsets = [0, 0, 24], sizes = [1, 9, 8], strides = [1, 1, 1]} : vector<1x9x32xf32> to vector<1x9x8xf32>
    %78 = vector.extract_strided_slice %23 {offsets = [0, 0, 24], sizes = [1, 9, 8], strides = [1, 1, 1]} : vector<1x9x32xf32> to vector<1x9x8xf32>
    %79 = vector.extract_strided_slice %25 {offsets = [0, 0, 24], sizes = [1, 9, 8], strides = [1, 1, 1]} : vector<1x9x32xf32> to vector<1x9x8xf32>
    "tpu.trace_start"() <{level = 10 : i32, message = "bqd,bkd->bqk"}> : () -> ()
    %cst_31 = arith.constant dense<0.000000e+00> : vector<1x9x9xf32>
    %80 = tpu.matmul %77, %78, %cst_31 {dimension_numbers = #tpu.dot_dimension_numbers<[2], [2], [1], [1], [0, 0, 0, 1, 1, 1], [0], [0]>} : vector<1x9x8xf32>, vector<1x9x8xf32>, vector<1x9x9xf32> -> vector<1x9x9xf32>
    "tpu.trace_stop"() : () -> ()
    %cst_32 = arith.constant 0.353553385 : f32
    %81 = vector.broadcast %cst_32 : f32 to vector<1x9x9xf32>
    %82 = arith.mulf %80, %81 : vector<1x9x9xf32>
    %cst_33 = arith.constant dense<0xFF800000> : vector<1x9xf32>
    %83 = vector.multi_reduction <maximumf>, %82, %cst_33 [2] : vector<1x9x9xf32> to vector<1x9xf32>
    %84 = vector.shape_cast %83 : vector<1x9xf32> to vector<1x9x1xf32>
    %85 = vector.broadcast %84 : vector<1x9x1xf32> to vector<1x9x9xf32>
    %86 = arith.subf %82, %85 : vector<1x9x9xf32>
    %87 = math.exp %86 : vector<1x9x9xf32>
    %cst_34 = arith.constant dense<0.000000e+00> : vector<1x9xf32>
    %88 = vector.multi_reduction <add>, %87, %cst_34 [2] : vector<1x9x9xf32> to vector<1x9xf32>
    %89 = vector.shape_cast %88 : vector<1x9xf32> to vector<1x9x1xf32>
    %90 = tpu.reciprocal %89 : vector<1x9x1xf32> -> vector<1x9x1xf32>
    %91 = vector.broadcast %90 : vector<1x9x1xf32> to vector<1x9x9xf32>
    %92 = arith.mulf %87, %91 : vector<1x9x9xf32>
    "tpu.trace_start"() <{level = 10 : i32, message = "bqk,bkd->bqd"}> : () -> ()
    %cst_35 = arith.constant dense<0.000000e+00> : vector<1x9x8xf32>
    %93 = tpu.matmul %92, %79, %cst_35 {dimension_numbers = #tpu.dot_dimension_numbers<[2], [1], [1], [2], [0, 0, 0, 1, 1, 2], [0], [0]>} : vector<1x9x9xf32>, vector<1x9x8xf32>, vector<1x9x8xf32> -> vector<1x9x8xf32>
    "tpu.trace_stop"() : () -> ()
    %94 = tpu.concatenate %42, %59, %76, %93 in 2 : vector<1x9x8xf32>, vector<1x9x8xf32>, vector<1x9x8xf32>, vector<1x9x8xf32> -> vector<1x9x32xf32>
    %95 = vector.shape_cast %94 : vector<1x9x32xf32> to vector<9x32xf32>
    %c0_36 = arith.constant 0 : index
    %c0_37 = arith.constant 0 : index
    %c0_38 = arith.constant 0 : index
    %96 = vector.load %arg8[%c0_36, %c0_37, %c0_38] : memref<2x32x32xf32, #tpu.memory_space<vmem>>, vector<1x32x32xf32>
    %97 = vector.shape_cast %96 : vector<1x32x32xf32> to vector<32x32xf32>
    %cst_39 = arith.constant dense<0.000000e+00> : vector<9x32xf32>
    %98 = tpu.matmul %95, %97, %cst_39 {dimension_numbers = #tpu.dot_dimension_numbers<[1], [0], [0], [1], [0, 0, 1, 1], [], []>} : vector<9x32xf32>, vector<32x32xf32>, vector<9x32xf32> -> vector<9x32xf32>
    %c0_40 = arith.constant 0 : index
    %c0_41 = arith.constant 0 : index
    %c0_42 = arith.constant 0 : index
    %99 = vector.load %arg9[%c0_40, %c0_41, %c0_42] : memref<2x1x32xf32, #tpu.memory_space<vmem>>, vector<1x1x32xf32>
    %100 = vector.shape_cast %99 : vector<1x1x32xf32> to vector<1x32xf32>
    %101 = vector.broadcast %100 : vector<1x32xf32> to vector<9x32xf32>
    %102 = arith.addf %98, %101 : vector<9x32xf32>
    %103 = arith.addf %102, %12 : vector<9x32xf32>
    %c0_43 = arith.constant 0 : index
    %c0_44 = arith.constant 0 : index
    %c0_45 = arith.constant 0 : index
    %104 = vector.load %arg10[%c0_43, %c0_44, %c0_45] : memref<2x9x32xf32, #tpu.memory_space<vmem>>, vector<1x9x32xf32>
    %105 = vector.shape_cast %104 : vector<1x9x32xf32> to vector<9x32xf32>
    %c0_46 = arith.constant 0 : index
    %c0_47 = arith.constant 0 : index
    %c0_48 = arith.constant 0 : index
    %106 = vector.load %arg11[%c0_46, %c0_47, %c0_48] : memref<2x9x32xf32, #tpu.memory_space<vmem>>, vector<1x9x32xf32>
    %107 = vector.shape_cast %106 : vector<1x9x32xf32> to vector<9x32xf32>
    %108 = vector.shape_cast %103 : vector<9x32xf32> to vector<1x9x32xf32>
    %cst_49 = arith.constant dense<0.000000e+00> : vector<1xf32>
    %109 = vector.multi_reduction <add>, %108, %cst_49 [1, 2] : vector<1x9x32xf32> to vector<1xf32>
    %110 = vector.shape_cast %109 : vector<1xf32> to vector<1x1x1xf32>
    %111 = vector.extract %110[0, 0, 0] : f32 from vector<1x1x1xf32>
    %cst_50 = arith.constant 2.880000e+02 : f32
    %112 = arith.divf %111, %cst_50 : f32
    %113 = vector.broadcast %112 : f32 to vector<9x32xf32>
    %114 = arith.subf %103, %113 : vector<9x32xf32>
    %115 = arith.mulf %114, %114 : vector<9x32xf32>
    %116 = vector.shape_cast %115 : vector<9x32xf32> to vector<1x9x32xf32>
    %cst_51 = arith.constant dense<0.000000e+00> : vector<1xf32>
    %117 = vector.multi_reduction <add>, %116, %cst_51 [1, 2] : vector<1x9x32xf32> to vector<1xf32>
    %118 = vector.shape_cast %117 : vector<1xf32> to vector<1x1x1xf32>
    %119 = vector.extract %118[0, 0, 0] : f32 from vector<1x1x1xf32>
    %cst_52 = arith.constant 2.880000e+02 : f32
    %120 = arith.divf %119, %cst_52 : f32
    %121 = vector.broadcast %112 : f32 to vector<9x32xf32>
    %122 = arith.subf %103, %121 : vector<9x32xf32>
    %cst_53 = arith.constant 9.99999974E-6 : f32
    %123 = arith.addf %120, %cst_53 : f32
    %124 = math.rsqrt %123 : f32
    %125 = vector.broadcast %124 : f32 to vector<9x32xf32>
    %126 = arith.mulf %122, %125 : vector<9x32xf32>
    %127 = arith.mulf %126, %105 : vector<9x32xf32>
    %128 = arith.addf %127, %107 : vector<9x32xf32>
    %c0_54 = arith.constant 0 : index
    %c0_55 = arith.constant 0 : index
    %c0_56 = arith.constant 0 : index
    %129 = vector.load %arg12[%c0_54, %c0_55, %c0_56] : memref<2x32x32xf32, #tpu.memory_space<vmem>>, vector<1x32x32xf32>
    %130 = vector.shape_cast %129 : vector<1x32x32xf32> to vector<32x32xf32>
    %cst_57 = arith.constant dense<0.000000e+00> : vector<9x32xf32>
    %131 = tpu.matmul %128, %130, %cst_57 {dimension_numbers = #tpu.dot_dimension_numbers<[1], [0], [0], [1], [0, 0, 1, 1], [], []>} : vector<9x32xf32>, vector<32x32xf32>, vector<9x32xf32> -> vector<9x32xf32>
    %c0_58 = arith.constant 0 : index
    %c0_59 = arith.constant 0 : index
    %c0_60 = arith.constant 0 : index
    %132 = vector.load %arg13[%c0_58, %c0_59, %c0_60] : memref<2x1x32xf32, #tpu.memory_space<vmem>>, vector<1x1x32xf32>
    %133 = vector.shape_cast %132 : vector<1x1x32xf32> to vector<1x32xf32>
    %134 = vector.broadcast %133 : vector<1x32xf32> to vector<9x32xf32>
    %135 = arith.addf %131, %134 : vector<9x32xf32>
    %cst_61 = arith.constant 0.000000e+00 : f32
    %136 = vector.broadcast %cst_61 : f32 to vector<9x32xf32>
    %137 = arith.maximumf %135, %136 : vector<9x32xf32>
    %138 = arith.addf %128, %137 : vector<9x32xf32>
    %c0_62 = arith.constant 0 : index
    %c0_63 = arith.constant 0 : index
    %c0_64 = arith.constant 0 : index
    %139 = vector.load %arg14[%c0_62, %c0_63, %c0_64] : memref<2x9x32xf32, #tpu.memory_space<vmem>>, vector<1x9x32xf32>
    %140 = vector.shape_cast %139 : vector<1x9x32xf32> to vector<9x32xf32>
    %c0_65 = arith.constant 0 : index
    %c0_66 = arith.constant 0 : index
    %c0_67 = arith.constant 0 : index
    %141 = vector.load %arg15[%c0_65, %c0_66, %c0_67] : memref<2x9x32xf32, #tpu.memory_space<vmem>>, vector<1x9x32xf32>
    %142 = vector.shape_cast %141 : vector<1x9x32xf32> to vector<9x32xf32>
    %143 = vector.shape_cast %138 : vector<9x32xf32> to vector<1x9x32xf32>
    %cst_68 = arith.constant dense<0.000000e+00> : vector<1xf32>
    %144 = vector.multi_reduction <add>, %143, %cst_68 [1, 2] : vector<1x9x32xf32> to vector<1xf32>
    %145 = vector.shape_cast %144 : vector<1xf32> to vector<1x1x1xf32>
    %146 = vector.extract %145[0, 0, 0] : f32 from vector<1x1x1xf32>
    %cst_69 = arith.constant 2.880000e+02 : f32
    %147 = arith.divf %146, %cst_69 : f32
    %148 = vector.broadcast %147 : f32 to vector<9x32xf32>
    %149 = arith.subf %138, %148 : vector<9x32xf32>
    %150 = arith.mulf %149, %149 : vector<9x32xf32>
    %151 = vector.shape_cast %150 : vector<9x32xf32> to vector<1x9x32xf32>
    %cst_70 = arith.constant dense<0.000000e+00> : vector<1xf32>
    %152 = vector.multi_reduction <add>, %151, %cst_70 [1, 2] : vector<1x9x32xf32> to vector<1xf32>
    %153 = vector.shape_cast %152 : vector<1xf32> to vector<1x1x1xf32>
    %154 = vector.extract %153[0, 0, 0] : f32 from vector<1x1x1xf32>
    %cst_71 = arith.constant 2.880000e+02 : f32
    %155 = arith.divf %154, %cst_71 : f32
    %156 = vector.broadcast %147 : f32 to vector<9x32xf32>
    %157 = arith.subf %138, %156 : vector<9x32xf32>
    %cst_72 = arith.constant 9.99999974E-6 : f32
    %158 = arith.addf %155, %cst_72 : f32
    %159 = math.rsqrt %158 : f32
    %160 = vector.broadcast %159 : f32 to vector<9x32xf32>
    %161 = arith.mulf %157, %160 : vector<9x32xf32>
    %162 = arith.mulf %161, %140 : vector<9x32xf32>
    %163 = arith.addf %162, %142 : vector<9x32xf32>
    %c1 = arith.constant 1 : index
    %c0_73 = arith.constant 0 : index
    %c0_74 = arith.constant 0 : index
    %164 = vector.load %arg6[%c1, %c0_73, %c0_74] : memref<2x32x96xf32, #tpu.memory_space<vmem>>, vector<1x32x96xf32>
    %165 = vector.shape_cast %164 : vector<1x32x96xf32> to vector<32x96xf32>
    %cst_75 = arith.constant dense<0.000000e+00> : vector<9x96xf32>
    %166 = tpu.matmul %163, %165, %cst_75 {dimension_numbers = #tpu.dot_dimension_numbers<[1], [0], [0], [1], [0, 0, 1, 1], [], []>} : vector<9x32xf32>, vector<32x96xf32>, vector<9x96xf32> -> vector<9x96xf32>
    %c1_76 = arith.constant 1 : index
    %c0_77 = arith.constant 0 : index
    %c0_78 = arith.constant 0 : index
    %167 = vector.load %arg7[%c1_76, %c0_77, %c0_78] : memref<2x1x96xf32, #tpu.memory_space<vmem>>, vector<1x1x96xf32>
    %168 = vector.shape_cast %167 : vector<1x1x96xf32> to vector<1x96xf32>
    %169 = vector.broadcast %168 : vector<1x96xf32> to vector<9x96xf32>
    %170 = arith.addf %166, %169 : vector<9x96xf32>
    %171 = vector.extract_strided_slice %170 {offsets = [0, 0], sizes = [9, 32], strides = [1, 1]} : vector<9x96xf32> to vector<9x32xf32>
    %172 = vector.shape_cast %171 : vector<9x32xf32> to vector<1x9x32xf32>
    %173 = vector.extract_strided_slice %170 {offsets = [0, 32], sizes = [9, 32], strides = [1, 1]} : vector<9x96xf32> to vector<9x32xf32>
    %174 = vector.shape_cast %173 : vector<9x32xf32> to vector<1x9x32xf32>
    %175 = vector.extract_strided_slice %170 {offsets = [0, 64], sizes = [9, 32], strides = [1, 1]} : vector<9x96xf32> to vector<9x32xf32>
    %176 = vector.shape_cast %175 : vector<9x32xf32> to vector<1x9x32xf32>
    %177 = vector.extract_strided_slice %172 {offsets = [0, 0, 0], sizes = [1, 9, 8], strides = [1, 1, 1]} : vector<1x9x32xf32> to vector<1x9x8xf32>
    %178 = vector.extract_strided_slice %174 {offsets = [0, 0, 0], sizes = [1, 9, 8], strides = [1, 1, 1]} : vector<1x9x32xf32> to vector<1x9x8xf32>
    %179 = vector.extract_strided_slice %176 {offsets = [0, 0, 0], sizes = [1, 9, 8], strides = [1, 1, 1]} : vector<1x9x32xf32> to vector<1x9x8xf32>
    "tpu.trace_start"() <{level = 10 : i32, message = "bqd,bkd->bqk"}> : () -> ()
    %cst_79 = arith.constant dense<0.000000e+00> : vector<1x9x9xf32>
    %180 = tpu.matmul %177, %178, %cst_79 {dimension_numbers = #tpu.dot_dimension_numbers<[2], [2], [1], [1], [0, 0, 0, 1, 1, 1], [0], [0]>} : vector<1x9x8xf32>, vector<1x9x8xf32>, vector<1x9x9xf32> -> vector<1x9x9xf32>
    "tpu.trace_stop"() : () -> ()
    %cst_80 = arith.constant 0.353553385 : f32
    %181 = vector.broadcast %cst_80 : f32 to vector<1x9x9xf32>
    %182 = arith.mulf %180, %181 : vector<1x9x9xf32>
    %cst_81 = arith.constant dense<0xFF800000> : vector<1x9xf32>
    %183 = vector.multi_reduction <maximumf>, %182, %cst_81 [2] : vector<1x9x9xf32> to vector<1x9xf32>
    %184 = vector.shape_cast %183 : vector<1x9xf32> to vector<1x9x1xf32>
    %185 = vector.broadcast %184 : vector<1x9x1xf32> to vector<1x9x9xf32>
    %186 = arith.subf %182, %185 : vector<1x9x9xf32>
    %187 = math.exp %186 : vector<1x9x9xf32>
    %cst_82 = arith.constant dense<0.000000e+00> : vector<1x9xf32>
    %188 = vector.multi_reduction <add>, %187, %cst_82 [2] : vector<1x9x9xf32> to vector<1x9xf32>
    %189 = vector.shape_cast %188 : vector<1x9xf32> to vector<1x9x1xf32>
    %190 = tpu.reciprocal %189 : vector<1x9x1xf32> -> vector<1x9x1xf32>
    %191 = vector.broadcast %190 : vector<1x9x1xf32> to vector<1x9x9xf32>
    %192 = arith.mulf %187, %191 : vector<1x9x9xf32>
    "tpu.trace_start"() <{level = 10 : i32, message = "bqk,bkd->bqd"}> : () -> ()
    %cst_83 = arith.constant dense<0.000000e+00> : vector<1x9x8xf32>
    %193 = tpu.matmul %192, %179, %cst_83 {dimension_numbers = #tpu.dot_dimension_numbers<[2], [1], [1], [2], [0, 0, 0, 1, 1, 2], [0], [0]>} : vector<1x9x9xf32>, vector<1x9x8xf32>, vector<1x9x8xf32> -> vector<1x9x8xf32>
    "tpu.trace_stop"() : () -> ()
    %194 = vector.extract_strided_slice %172 {offsets = [0, 0, 8], sizes = [1, 9, 8], strides = [1, 1, 1]} : vector<1x9x32xf32> to vector<1x9x8xf32>
    %195 = vector.extract_strided_slice %174 {offsets = [0, 0, 8], sizes = [1, 9, 8], strides = [1, 1, 1]} : vector<1x9x32xf32> to vector<1x9x8xf32>
    %196 = vector.extract_strided_slice %176 {offsets = [0, 0, 8], sizes = [1, 9, 8], strides = [1, 1, 1]} : vector<1x9x32xf32> to vector<1x9x8xf32>
    "tpu.trace_start"() <{level = 10 : i32, message = "bqd,bkd->bqk"}> : () -> ()
    %cst_84 = arith.constant dense<0.000000e+00> : vector<1x9x9xf32>
    %197 = tpu.matmul %194, %195, %cst_84 {dimension_numbers = #tpu.dot_dimension_numbers<[2], [2], [1], [1], [0, 0, 0, 1, 1, 1], [0], [0]>} : vector<1x9x8xf32>, vector<1x9x8xf32>, vector<1x9x9xf32> -> vector<1x9x9xf32>
    "tpu.trace_stop"() : () -> ()
    %cst_85 = arith.constant 0.353553385 : f32
    %198 = vector.broadcast %cst_85 : f32 to vector<1x9x9xf32>
    %199 = arith.mulf %197, %198 : vector<1x9x9xf32>
    %cst_86 = arith.constant dense<0xFF800000> : vector<1x9xf32>
    %200 = vector.multi_reduction <maximumf>, %199, %cst_86 [2] : vector<1x9x9xf32> to vector<1x9xf32>
    %201 = vector.shape_cast %200 : vector<1x9xf32> to vector<1x9x1xf32>
    %202 = vector.broadcast %201 : vector<1x9x1xf32> to vector<1x9x9xf32>
    %203 = arith.subf %199, %202 : vector<1x9x9xf32>
    %204 = math.exp %203 : vector<1x9x9xf32>
    %cst_87 = arith.constant dense<0.000000e+00> : vector<1x9xf32>
    %205 = vector.multi_reduction <add>, %204, %cst_87 [2] : vector<1x9x9xf32> to vector<1x9xf32>
    %206 = vector.shape_cast %205 : vector<1x9xf32> to vector<1x9x1xf32>
    %207 = tpu.reciprocal %206 : vector<1x9x1xf32> -> vector<1x9x1xf32>
    %208 = vector.broadcast %207 : vector<1x9x1xf32> to vector<1x9x9xf32>
    %209 = arith.mulf %204, %208 : vector<1x9x9xf32>
    "tpu.trace_start"() <{level = 10 : i32, message = "bqk,bkd->bqd"}> : () -> ()
    %cst_88 = arith.constant dense<0.000000e+00> : vector<1x9x8xf32>
    %210 = tpu.matmul %209, %196, %cst_88 {dimension_numbers = #tpu.dot_dimension_numbers<[2], [1], [1], [2], [0, 0, 0, 1, 1, 2], [0], [0]>} : vector<1x9x9xf32>, vector<1x9x8xf32>, vector<1x9x8xf32> -> vector<1x9x8xf32>
    "tpu.trace_stop"() : () -> ()
    %211 = vector.extract_strided_slice %172 {offsets = [0, 0, 16], sizes = [1, 9, 8], strides = [1, 1, 1]} : vector<1x9x32xf32> to vector<1x9x8xf32>
    %212 = vector.extract_strided_slice %174 {offsets = [0, 0, 16], sizes = [1, 9, 8], strides = [1, 1, 1]} : vector<1x9x32xf32> to vector<1x9x8xf32>
    %213 = vector.extract_strided_slice %176 {offsets = [0, 0, 16], sizes = [1, 9, 8], strides = [1, 1, 1]} : vector<1x9x32xf32> to vector<1x9x8xf32>
    "tpu.trace_start"() <{level = 10 : i32, message = "bqd,bkd->bqk"}> : () -> ()
    %cst_89 = arith.constant dense<0.000000e+00> : vector<1x9x9xf32>
    %214 = tpu.matmul %211, %212, %cst_89 {dimension_numbers = #tpu.dot_dimension_numbers<[2], [2], [1], [1], [0, 0, 0, 1, 1, 1], [0], [0]>} : vector<1x9x8xf32>, vector<1x9x8xf32>, vector<1x9x9xf32> -> vector<1x9x9xf32>
    "tpu.trace_stop"() : () -> ()
    %cst_90 = arith.constant 0.353553385 : f32
    %215 = vector.broadcast %cst_90 : f32 to vector<1x9x9xf32>
    %216 = arith.mulf %214, %215 : vector<1x9x9xf32>
    %cst_91 = arith.constant dense<0xFF800000> : vector<1x9xf32>
    %217 = vector.multi_reduction <maximumf>, %216, %cst_91 [2] : vector<1x9x9xf32> to vector<1x9xf32>
    %218 = vector.shape_cast %217 : vector<1x9xf32> to vector<1x9x1xf32>
    %219 = vector.broadcast %218 : vector<1x9x1xf32> to vector<1x9x9xf32>
    %220 = arith.subf %216, %219 : vector<1x9x9xf32>
    %221 = math.exp %220 : vector<1x9x9xf32>
    %cst_92 = arith.constant dense<0.000000e+00> : vector<1x9xf32>
    %222 = vector.multi_reduction <add>, %221, %cst_92 [2] : vector<1x9x9xf32> to vector<1x9xf32>
    %223 = vector.shape_cast %222 : vector<1x9xf32> to vector<1x9x1xf32>
    %224 = tpu.reciprocal %223 : vector<1x9x1xf32> -> vector<1x9x1xf32>
    %225 = vector.broadcast %224 : vector<1x9x1xf32> to vector<1x9x9xf32>
    %226 = arith.mulf %221, %225 : vector<1x9x9xf32>
    "tpu.trace_start"() <{level = 10 : i32, message = "bqk,bkd->bqd"}> : () -> ()
    %cst_93 = arith.constant dense<0.000000e+00> : vector<1x9x8xf32>
    %227 = tpu.matmul %226, %213, %cst_93 {dimension_numbers = #tpu.dot_dimension_numbers<[2], [1], [1], [2], [0, 0, 0, 1, 1, 2], [0], [0]>} : vector<1x9x9xf32>, vector<1x9x8xf32>, vector<1x9x8xf32> -> vector<1x9x8xf32>
    "tpu.trace_stop"() : () -> ()
    %228 = vector.extract_strided_slice %172 {offsets = [0, 0, 24], sizes = [1, 9, 8], strides = [1, 1, 1]} : vector<1x9x32xf32> to vector<1x9x8xf32>
    %229 = vector.extract_strided_slice %174 {offsets = [0, 0, 24], sizes = [1, 9, 8], strides = [1, 1, 1]} : vector<1x9x32xf32> to vector<1x9x8xf32>
    %230 = vector.extract_strided_slice %176 {offsets = [0, 0, 24], sizes = [1, 9, 8], strides = [1, 1, 1]} : vector<1x9x32xf32> to vector<1x9x8xf32>
    "tpu.trace_start"() <{level = 10 : i32, message = "bqd,bkd->bqk"}> : () -> ()
    %cst_94 = arith.constant dense<0.000000e+00> : vector<1x9x9xf32>
    %231 = tpu.matmul %228, %229, %cst_94 {dimension_numbers = #tpu.dot_dimension_numbers<[2], [2], [1], [1], [0, 0, 0, 1, 1, 1], [0], [0]>} : vector<1x9x8xf32>, vector<1x9x8xf32>, vector<1x9x9xf32> -> vector<1x9x9xf32>
    "tpu.trace_stop"() : () -> ()
    %cst_95 = arith.constant 0.353553385 : f32
    %232 = vector.broadcast %cst_95 : f32 to vector<1x9x9xf32>
    %233 = arith.mulf %231, %232 : vector<1x9x9xf32>
    %cst_96 = arith.constant dense<0xFF800000> : vector<1x9xf32>
    %234 = vector.multi_reduction <maximumf>, %233, %cst_96 [2] : vector<1x9x9xf32> to vector<1x9xf32>
    %235 = vector.shape_cast %234 : vector<1x9xf32> to vector<1x9x1xf32>
    %236 = vector.broadcast %235 : vector<1x9x1xf32> to vector<1x9x9xf32>
    %237 = arith.subf %233, %236 : vector<1x9x9xf32>
    %238 = math.exp %237 : vector<1x9x9xf32>
    %cst_97 = arith.constant dense<0.000000e+00> : vector<1x9xf32>
    %239 = vector.multi_reduction <add>, %238, %cst_97 [2] : vector<1x9x9xf32> to vector<1x9xf32>
    %240 = vector.shape_cast %239 : vector<1x9xf32> to vector<1x9x1xf32>
    %241 = tpu.reciprocal %240 : vector<1x9x1xf32> -> vector<1x9x1xf32>
    %242 = vector.broadcast %241 : vector<1x9x1xf32> to vector<1x9x9xf32>
    %243 = arith.mulf %238, %242 : vector<1x9x9xf32>
    "tpu.trace_start"() <{level = 10 : i32, message = "bqk,bkd->bqd"}> : () -> ()
    %cst_98 = arith.constant dense<0.000000e+00> : vector<1x9x8xf32>
    %244 = tpu.matmul %243, %230, %cst_98 {dimension_numbers = #tpu.dot_dimension_numbers<[2], [1], [1], [2], [0, 0, 0, 1, 1, 2], [0], [0]>} : vector<1x9x9xf32>, vector<1x9x8xf32>, vector<1x9x8xf32> -> vector<1x9x8xf32>
    "tpu.trace_stop"() : () -> ()
    %245 = tpu.concatenate %193, %210, %227, %244 in 2 : vector<1x9x8xf32>, vector<1x9x8xf32>, vector<1x9x8xf32>, vector<1x9x8xf32> -> vector<1x9x32xf32>
    %246 = vector.shape_cast %245 : vector<1x9x32xf32> to vector<9x32xf32>
    %c1_99 = arith.constant 1 : index
    %c0_100 = arith.constant 0 : index
    %c0_101 = arith.constant 0 : index
    %247 = vector.load %arg8[%c1_99, %c0_100, %c0_101] : memref<2x32x32xf32, #tpu.memory_space<vmem>>, vector<1x32x32xf32>
    %248 = vector.shape_cast %247 : vector<1x32x32xf32> to vector<32x32xf32>
    %cst_102 = arith.constant dense<0.000000e+00> : vector<9x32xf32>
    %249 = tpu.matmul %246, %248, %cst_102 {dimension_numbers = #tpu.dot_dimension_numbers<[1], [0], [0], [1], [0, 0, 1, 1], [], []>} : vector<9x32xf32>, vector<32x32xf32>, vector<9x32xf32> -> vector<9x32xf32>
    %c1_103 = arith.constant 1 : index
    %c0_104 = arith.constant 0 : index
    %c0_105 = arith.constant 0 : index
    %250 = vector.load %arg9[%c1_103, %c0_104, %c0_105] : memref<2x1x32xf32, #tpu.memory_space<vmem>>, vector<1x1x32xf32>
    %251 = vector.shape_cast %250 : vector<1x1x32xf32> to vector<1x32xf32>
    %252 = vector.broadcast %251 : vector<1x32xf32> to vector<9x32xf32>
    %253 = arith.addf %249, %252 : vector<9x32xf32>
    %254 = arith.addf %253, %163 : vector<9x32xf32>
    %c1_106 = arith.constant 1 : index
    %c0_107 = arith.constant 0 : index
    %c0_108 = arith.constant 0 : index
    %255 = vector.load %arg10[%c1_106, %c0_107, %c0_108] : memref<2x9x32xf32, #tpu.memory_space<vmem>>, vector<1x9x32xf32>
    %256 = vector.shape_cast %255 : vector<1x9x32xf32> to vector<9x32xf32>
    %c1_109 = arith.constant 1 : index
    %c0_110 = arith.constant 0 : index
    %c0_111 = arith.constant 0 : index
    %257 = vector.load %arg11[%c1_109, %c0_110, %c0_111] : memref<2x9x32xf32, #tpu.memory_space<vmem>>, vector<1x9x32xf32>
    %258 = vector.shape_cast %257 : vector<1x9x32xf32> to vector<9x32xf32>
    %259 = vector.shape_cast %254 : vector<9x32xf32> to vector<1x9x32xf32>
    %cst_112 = arith.constant dense<0.000000e+00> : vector<1xf32>
    %260 = vector.multi_reduction <add>, %259, %cst_112 [1, 2] : vector<1x9x32xf32> to vector<1xf32>
    %261 = vector.shape_cast %260 : vector<1xf32> to vector<1x1x1xf32>
    %262 = vector.extract %261[0, 0, 0] : f32 from vector<1x1x1xf32>
    %cst_113 = arith.constant 2.880000e+02 : f32
    %263 = arith.divf %262, %cst_113 : f32
    %264 = vector.broadcast %263 : f32 to vector<9x32xf32>
    %265 = arith.subf %254, %264 : vector<9x32xf32>
    %266 = arith.mulf %265, %265 : vector<9x32xf32>
    %267 = vector.shape_cast %266 : vector<9x32xf32> to vector<1x9x32xf32>
    %cst_114 = arith.constant dense<0.000000e+00> : vector<1xf32>
    %268 = vector.multi_reduction <add>, %267, %cst_114 [1, 2] : vector<1x9x32xf32> to vector<1xf32>
    %269 = vector.shape_cast %268 : vector<1xf32> to vector<1x1x1xf32>
    %270 = vector.extract %269[0, 0, 0] : f32 from vector<1x1x1xf32>
    %cst_115 = arith.constant 2.880000e+02 : f32
    %271 = arith.divf %270, %cst_115 : f32
    %272 = vector.broadcast %263 : f32 to vector<9x32xf32>
    %273 = arith.subf %254, %272 : vector<9x32xf32>
    %cst_116 = arith.constant 9.99999974E-6 : f32
    %274 = arith.addf %271, %cst_116 : f32
    %275 = math.rsqrt %274 : f32
    %276 = vector.broadcast %275 : f32 to vector<9x32xf32>
    %277 = arith.mulf %273, %276 : vector<9x32xf32>
    %278 = arith.mulf %277, %256 : vector<9x32xf32>
    %279 = arith.addf %278, %258 : vector<9x32xf32>
    %c1_117 = arith.constant 1 : index
    %c0_118 = arith.constant 0 : index
    %c0_119 = arith.constant 0 : index
    %280 = vector.load %arg12[%c1_117, %c0_118, %c0_119] : memref<2x32x32xf32, #tpu.memory_space<vmem>>, vector<1x32x32xf32>
    %281 = vector.shape_cast %280 : vector<1x32x32xf32> to vector<32x32xf32>
    %cst_120 = arith.constant dense<0.000000e+00> : vector<9x32xf32>
    %282 = tpu.matmul %279, %281, %cst_120 {dimension_numbers = #tpu.dot_dimension_numbers<[1], [0], [0], [1], [0, 0, 1, 1], [], []>} : vector<9x32xf32>, vector<32x32xf32>, vector<9x32xf32> -> vector<9x32xf32>
    %c1_121 = arith.constant 1 : index
    %c0_122 = arith.constant 0 : index
    %c0_123 = arith.constant 0 : index
    %283 = vector.load %arg13[%c1_121, %c0_122, %c0_123] : memref<2x1x32xf32, #tpu.memory_space<vmem>>, vector<1x1x32xf32>
    %284 = vector.shape_cast %283 : vector<1x1x32xf32> to vector<1x32xf32>
    %285 = vector.broadcast %284 : vector<1x32xf32> to vector<9x32xf32>
    %286 = arith.addf %282, %285 : vector<9x32xf32>
    %cst_124 = arith.constant 0.000000e+00 : f32
    %287 = vector.broadcast %cst_124 : f32 to vector<9x32xf32>
    %288 = arith.maximumf %286, %287 : vector<9x32xf32>
    %289 = arith.addf %279, %288 : vector<9x32xf32>
    %c1_125 = arith.constant 1 : index
    %c0_126 = arith.constant 0 : index
    %c0_127 = arith.constant 0 : index
    %290 = vector.load %arg14[%c1_125, %c0_126, %c0_127] : memref<2x9x32xf32, #tpu.memory_space<vmem>>, vector<1x9x32xf32>
    %291 = vector.shape_cast %290 : vector<1x9x32xf32> to vector<9x32xf32>
    %c1_128 = arith.constant 1 : index
    %c0_129 = arith.constant 0 : index
    %c0_130 = arith.constant 0 : index
    %292 = vector.load %arg15[%c1_128, %c0_129, %c0_130] : memref<2x9x32xf32, #tpu.memory_space<vmem>>, vector<1x9x32xf32>
    %293 = vector.shape_cast %292 : vector<1x9x32xf32> to vector<9x32xf32>
    %294 = vector.shape_cast %289 : vector<9x32xf32> to vector<1x9x32xf32>
    %cst_131 = arith.constant dense<0.000000e+00> : vector<1xf32>
    %295 = vector.multi_reduction <add>, %294, %cst_131 [1, 2] : vector<1x9x32xf32> to vector<1xf32>
    %296 = vector.shape_cast %295 : vector<1xf32> to vector<1x1x1xf32>
    %297 = vector.extract %296[0, 0, 0] : f32 from vector<1x1x1xf32>
    %cst_132 = arith.constant 2.880000e+02 : f32
    %298 = arith.divf %297, %cst_132 : f32
    %299 = vector.broadcast %298 : f32 to vector<9x32xf32>
    %300 = arith.subf %289, %299 : vector<9x32xf32>
    %301 = arith.mulf %300, %300 : vector<9x32xf32>
    %302 = vector.shape_cast %301 : vector<9x32xf32> to vector<1x9x32xf32>
    %cst_133 = arith.constant dense<0.000000e+00> : vector<1xf32>
    %303 = vector.multi_reduction <add>, %302, %cst_133 [1, 2] : vector<1x9x32xf32> to vector<1xf32>
    %304 = vector.shape_cast %303 : vector<1xf32> to vector<1x1x1xf32>
    %305 = vector.extract %304[0, 0, 0] : f32 from vector<1x1x1xf32>
    %cst_134 = arith.constant 2.880000e+02 : f32
    %306 = arith.divf %305, %cst_134 : f32
    %307 = vector.broadcast %298 : f32 to vector<9x32xf32>
    %308 = arith.subf %289, %307 : vector<9x32xf32>
    %cst_135 = arith.constant 9.99999974E-6 : f32
    %309 = arith.addf %306, %cst_135 : f32
    %310 = math.rsqrt %309 : f32
    %311 = vector.broadcast %310 : f32 to vector<9x32xf32>
    %312 = arith.mulf %308, %311 : vector<9x32xf32>
    %313 = arith.mulf %312, %291 : vector<9x32xf32>
    %314 = arith.addf %313, %293 : vector<9x32xf32>
    %315 = vector.extract_strided_slice %314 {offsets = [0, 0], sizes = [1, 32], strides = [1, 1]} : vector<9x32xf32> to vector<1x32xf32>
    %c0_136 = arith.constant 0 : index
    %c0_137 = arith.constant 0 : index
    %316 = vector.load %arg16[%c0_136, %c0_137] : memref<32x10xf32, #tpu.memory_space<vmem>>, vector<32x10xf32>
    %cst_138 = arith.constant dense<0.000000e+00> : vector<1x10xf32>
    %317 = tpu.matmul %315, %316, %cst_138 {dimension_numbers = #tpu.dot_dimension_numbers<[1], [0], [0], [1], [0, 0, 1, 1], [], []>} : vector<1x32xf32>, vector<32x10xf32>, vector<1x10xf32> -> vector<1x10xf32>
    %c0_139 = arith.constant 0 : index
    %c0_140 = arith.constant 0 : index
    %318 = vector.load %arg17[%c0_139, %c0_140] : memref<1x10xf32, #tpu.memory_space<vmem>>, vector<1x10xf32>
    %319 = arith.addf %317, %318 : vector<1x10xf32>
    %320 = vector.shape_cast %319 : vector<1x10xf32> to vector<1x1x10xf32>
    %c0_141 = arith.constant 0 : index
    %c0_142 = arith.constant 0 : index
    %c0_143 = arith.constant 0 : index
    %321 = vector.load %arg18[%c0_141, %c0_142, %c0_143] : memref<1x1x10xf32, #tpu.memory_space<vmem>>, vector<1x1x10xf32>
    tpu.vector_store %arg18[%c0_141, %c0_142, %c0_143], %320 {strides = array<i32>} : memref<1x1x10xf32, #tpu.memory_space<vmem>>, vector<1x1x10xf32>,
    return
  }
  func.func @transform_0(%arg0: i32) -> (i32, i32) {
    %c0_i32 = arith.constant 0 : i32
    %c0_i32_0 = arith.constant 0 : i32
    return %arg0, %c0_i32 : i32, i32
  }
  func.func @transform_1(%arg0: i32) -> (i32, i32) {
    %c0_i32 = arith.constant 0 : i32
    %c0_i32_0 = arith.constant 0 : i32
    %c0_i32_1 = arith.constant 0 : i32
    return %c0_i32, %c0_i32_0 : i32, i32
  }
  func.func @transform_2(%arg0: i32) -> (i32, i32) {
    %c0_i32 = arith.constant 0 : i32
    %c0_i32_0 = arith.constant 0 : i32
    %c0_i32_1 = arith.constant 0 : i32
    return %c0_i32, %c0_i32_0 : i32, i32
  }
  func.func @transform_3(%arg0: i32) -> (i32, i32) {
    %c0_i32 = arith.constant 0 : i32
    %c0_i32_0 = arith.constant 0 : i32
    %c0_i32_1 = arith.constant 0 : i32
    return %c0_i32, %c0_i32_0 : i32, i32
  }
  func.func @transform_4(%arg0: i32) -> (i32, i32) {
    %c0_i32 = arith.constant 0 : i32
    %c0_i32_0 = arith.constant 0 : i32
    %c0_i32_1 = arith.constant 0 : i32
    return %c0_i32, %c0_i32_0 : i32, i32
  }
  func.func @transform_5(%arg0: i32) -> (i32, i32, i32) {
    %c0_i32 = arith.constant 0 : i32
    %c0_i32_0 = arith.constant 0 : i32
    %c0_i32_1 = arith.constant 0 : i32
    %c0_i32_2 = arith.constant 0 : i32
    return %c0_i32, %c0_i32_0, %c0_i32_1 : i32, i32, i32
  }
  func.func @transform_6(%arg0: i32) -> (i32, i32, i32) {
    %c0_i32 = arith.constant 0 : i32
    %c0_i32_0 = arith.constant 0 : i32
    %c0_i32_1 = arith.constant 0 : i32
    %c0_i32_2 = arith.constant 0 : i32
    return %c0_i32, %c0_i32_0, %c0_i32_1 : i32, i32, i32
  }
  func.func @transform_7(%arg0: i32) -> (i32, i32, i32) {
    %c0_i32 = arith.constant 0 : i32
    %c0_i32_0 = arith.constant 0 : i32
    %c0_i32_1 = arith.constant 0 : i32
    %c0_i32_2 = arith.constant 0 : i32
    return %c0_i32, %c0_i32_0, %c0_i32_1 : i32, i32, i32
  }
  func.func @transform_8(%arg0: i32) -> (i32, i32, i32) {
    %c0_i32 = arith.constant 0 : i32
    %c0_i32_0 = arith.constant 0 : i32
    %c0_i32_1 = arith.constant 0 : i32
    %c0_i32_2 = arith.constant 0 : i32
    return %c0_i32, %c0_i32_0, %c0_i32_1 : i32, i32, i32
  }
  func.func @transform_9(%arg0: i32) -> (i32, i32, i32) {
    %c0_i32 = arith.constant 0 : i32
    %c0_i32_0 = arith.constant 0 : i32
    %c0_i32_1 = arith.constant 0 : i32
    %c0_i32_2 = arith.constant 0 : i32
    return %c0_i32, %c0_i32_0, %c0_i32_1 : i32, i32, i32
  }
  func.func @transform_10(%arg0: i32) -> (i32, i32, i32) {
    %c0_i32 = arith.constant 0 : i32
    %c0_i32_0 = arith.constant 0 : i32
    %c0_i32_1 = arith.constant 0 : i32
    %c0_i32_2 = arith.constant 0 : i32
    return %c0_i32, %c0_i32_0, %c0_i32_1 : i32, i32, i32
  }
  func.func @transform_11(%arg0: i32) -> (i32, i32, i32) {
    %c0_i32 = arith.constant 0 : i32
    %c0_i32_0 = arith.constant 0 : i32
    %c0_i32_1 = arith.constant 0 : i32
    %c0_i32_2 = arith.constant 0 : i32
    return %c0_i32, %c0_i32_0, %c0_i32_1 : i32, i32, i32
  }
  func.func @transform_12(%arg0: i32) -> (i32, i32, i32) {
    %c0_i32 = arith.constant 0 : i32
    %c0_i32_0 = arith.constant 0 : i32
    %c0_i32_1 = arith.constant 0 : i32
    %c0_i32_2 = arith.constant 0 : i32
    return %c0_i32, %c0_i32_0, %c0_i32_1 : i32, i32, i32
  }
  func.func @transform_13(%arg0: i32) -> (i32, i32, i32) {
    %c0_i32 = arith.constant 0 : i32
    %c0_i32_0 = arith.constant 0 : i32
    %c0_i32_1 = arith.constant 0 : i32
    %c0_i32_2 = arith.constant 0 : i32
    return %c0_i32, %c0_i32_0, %c0_i32_1 : i32, i32, i32
  }
  func.func @transform_14(%arg0: i32) -> (i32, i32, i32) {
    %c0_i32 = arith.constant 0 : i32
    %c0_i32_0 = arith.constant 0 : i32
    %c0_i32_1 = arith.constant 0 : i32
    %c0_i32_2 = arith.constant 0 : i32
    return %c0_i32, %c0_i32_0, %c0_i32_1 : i32, i32, i32
  }
  func.func @transform_15(%arg0: i32) -> (i32, i32) {
    %c0_i32 = arith.constant 0 : i32
    %c0_i32_0 = arith.constant 0 : i32
    %c0_i32_1 = arith.constant 0 : i32
    return %c0_i32, %c0_i32_0 : i32, i32
  }
  func.func @transform_16(%arg0: i32) -> (i32, i32) {
    %c0_i32 = arith.constant 0 : i32
    %c0_i32_0 = arith.constant 0 : i32
    %c0_i32_1 = arith.constant 0 : i32
    return %c0_i32, %c0_i32_0 : i32, i32
  }
  func.func @transform_17(%arg0: i32) -> (i32, i32, i32) {
    %c0_i32 = arith.constant 0 : i32
    %c0_i32_0 = arith.constant 0 : i32
    %c0_i32_1 = arith.constant 0 : i32
    return %arg0, %c0_i32, %c0_i32_0 : i32, i32, i32
  }
}

</mosaic_0001>

<bundles_post_ra>
// kernel: tpu_custom_call.1
= control target key start
LH: loop header
LB: loop body
LE: loop exit
PB: predicated region body
PF: predicated region fallthrough
CT: control target
= control target key end

     0   :  { %s5133_s0 = inlined_call_operand.hbm [shape: f32[16,12], index: 0, kind: input, shape index: {}]   ;;  %s5134_s1 = inlined_call_operand.hbm [shape: f32[12,32], index: 1, kind: input, shape index: {}]   ;;  %s5135_s2 = inlined_call_operand.hbm [shape: f32[1,32], index: 2, kind: input, shape index: {}]   ;;  %s5136_s3 = inlined_call_operand.hbm [shape: f32[1,32], index: 3, kind: input, shape index: {}]   ;;  %s5137_s4 = inlined_call_operand.hbm [shape: f32[9,32], index: 4, kind: input, shape index: {}]   ;;  %s5138_s5 = inlined_call_operand.vmem [shape: f32[2,32,96], index: 5, kind: input, shape index: {}]   ;;  %s5139_s6 = inlined_call_operand.hbm [shape: f32[2,1,96], index: 6, kind: input, shape index: {}]   ;;  %s5140_s7 = inlined_call_operand.vmem [shape: f32[2,32,32], index: 7, kind: input, shape index: {}]   ;;  %s5141_s8 = inlined_call_operand.hbm [shape: f32[2,1,32], index: 8, kind: input, shape index: {}]   ;;  %s5142_s9 = inlined_call_operand.vmem [shape: f32[2,9,32], index: 9, kind: input, shape index: {}]   ;;  %s5143_s10 = inlined_call_operand.vmem [shape: f32[2,9,32], index: 10, kind: input, shape index: {}]   ;;  %s5144_s11 = inlined_call_operand.vmem [shape: f32[2,32,32], index: 11, kind: input, shape index: {}]   ;;  %s5145_s12 = inlined_call_operand.vmem [shape: f32[2,1,32], index: 12, kind: input, shape index: {}]   ;;  %s5146_s13 = inlined_call_operand.vmem [shape: f32[2,9,32], index: 13, kind: input, shape index: {}]   ;;  %s5147_s14 = inlined_call_operand.vmem [shape: f32[2,9,32], index: 14, kind: input, shape index: {}]   ;;  %s5148_s15 = inlined_call_operand.vmem [shape: f32[32,10], index: 15, kind: input, shape index: {}]   ;;  %s5149_s16 = inlined_call_operand.vmem [shape: f32[1,10], index: 16, kind: input, shape index: {}]   ;;  %s5150_s17 = inlined_call_operand.hbm [shape: f32[2,1,10], index: 17, kind: output, shape index: {}]  }
   0x1   :  { %5181 = sst [smem:[#allocation21_spill]] %s5133_s0 }
   0x2   :  { %5182 = sst [smem:[#allocation22_spill]] %s5134_s1 }
   0x3   :  { %5183 = sst [smem:[#allocation23_spill]] %s5135_s2 }
   0x4   :  { %5184 = sst [smem:[#allocation24_spill]] %s5136_s3 }
   0x5   :  { %5185 = sst [smem:[#allocation25_spill]] %s5137_s4 }
   0x6   :  { %5186 = sst [smem:[#allocation26_spill]] %s5139_s6 }
   0x7   :  { %5187 = sst [smem:[#allocation27_spill]] %s5141_s8 }
   0x8   :  { %5188 = sst [smem:[#allocation28_spill]] %s5146_s13 }
   0x9   :  { %5189 = sst [smem:[#allocation29_spill]] %s5147_s14 }
   0xa   :  { %5190 = sst [smem:[#allocation30_spill]] %s5148_s15 }
   0xb   :  { %5191 = sst [smem:[#allocation31_spill]] %s5149_s16 }
   0xc   :  { %5192 = sst [smem:[#allocation32_spill]] %s5150_s17 }
   0xd   :  { %22 = vsyncpa [#allocation3], 0 }
   0xe   :  { %24 = vsyncpa [#allocation3 + $0x1], 0 }
   0xf   :  { %25 = vsyncpa [#allocation6], 0 }
  0x10   :  { %26 = vsyncpa [#allocation9], 0 }
  0x11   :  { %27 = vsyncpa [#allocation12], 0 }
  0x12   :  { %28 = vsyncpa [#allocation4], 0 }
  0x13   :  { %30 = vsyncpa [#allocation4 + $0x1], 0  ;;  %s4448_s24 = smov 0   ;;  %s4450_s25 = smov 0  }
  0x14   :  { %s4452_s26 = smov 0   ;;  %s4454_s27 = smov 0  }
  0x15 LB: > { %s4330_s28 = smov [#allocation5]   ;;  %s4469_s0 = sadd.s32 4294967295, %s4328_s27   ;;  %s4328_s27 = sphi %s4454_s27, %s5241_s27   ;;  %s4324_s26 = sphi %s4452_s26, %s5240_s26   ;;  %s4320_s25 = sphi %s4450_s25, %s5239_s25   ;;  %s4316_s24 = sphi %s4448_s24, %s5238_s24  }
  0x16   : > { %s441_s29 = sshll.u32 %s4330_s28, 4  ;;  %p3423_p0 = scmp.ge.s32.totalorder %s4328_s27, 1  ;;  %s442_s29 = int_to_ptr.vmem [resolvable:$true] %s441_s29 }
  0x17   : > { %p5157_p1 = scmp.eq.s32.totalorder %s4469_s0, 0  ;;  %p429_p2 = scmp.lt.s32.totalorder %s4328_s27, 3 }
  0x18   : > { %s4331_s18 = smov [#allocation8]   ;;  %s4332_s20 = smov [#allocation11]  }
  0x19   : > { %p4474_p3 = pnand %p3423_p0, %p429_p2  ;;  %s466_s19 = sshll.u32 %s4331_s18, 4  ;;  %s467_s19 = int_to_ptr.vmem [resolvable:$true] %s466_s19 }
  0x1a   : > { %s492_s21 = sshll.u32 %s4332_s20, 4  ;;  %s4079_s23 = scalar_lea.vmem %s442_s29, 256  ;;  %s4487_s21 = int_to_ptr.vmem [resolvable:$true] %s492_s21 }
  0x1b   : > { %s5193_s30 = scalar_select %p4474_p3, 1, 0 }
  0x1c   : > { %p3897_p5 = pneg %p4474_p3  ;;  %p4080_p8 = scmp.ne.s32.totalorder %s442_s29, %s4079_s23 }
  0x1d   : > { %p4087_p11 = scmp.lt.s32.totalorder %s442_s29, %s442_s29  ;;  %p4088_p12 = scmp.lt.s32.totalorder %s4079_s23, %s4079_s23 }
  0x1e   : > { %p4483_p6 = pnand %p3897_p5, %p5157_p1 }
  0x1f   : > { %p4089_p13 = por %p4088_p12, %p4087_p11 }
  0x20   : > { %p4491_p7 = pneg %p4483_p6 }
  0x22   : > { %p4082_p9 = pnand %p4080_p8, %p4491_p7 }
  0x24   : > { %p4083_p10 = pneg %p4082_p9 }
  0x26   : > { %p4090_p0 = pnand %p4089_p13, %p4083_p10 }
  0x28   : > { %4093 = shalt.err (!%p4090_p0)
}
  0x29   : > { %s5156_s28 = smov 128   ;;  %s4334_s18 = smov 8  }
  0x2a   : > { %s5196_s16 = sld [smem:[#allocation22_spill]]  ;;  %s4105_s15 = scalar_lea.vmem %s467_s19, 16 }
  0x2b   : > { %p4106_p2 = scmp.ne.s32.totalorder %s467_s19, %s4105_s15  ;;  %s4112_s23 = scalar_lea.vmem %s467_s19, 32 }
  0x2c   : > { %p4113_p9 = scmp.lt.s32.totalorder %s467_s19, %s467_s19  ;;  %p4114_p10 = scmp.lt.s32.totalorder %s4112_s23, %s4105_s15 }
  0x2d   : > { %p4108_p5 = pnand %p4106_p2, %p4491_p7 }
  0x2e   : > { %p4115_p11 = por %p4114_p10, %p4113_p9 }
  0x2f   : > { %p4109_p8 = pneg %p4108_p5 }
  0x30   : > { %3900 = dma.hbm_to_vmem [thread:$0]  (!%p4483_p6), %s5196_s16, 256, %s442_s29, [#allocation6], %s5156_s28, %s5156_s28, %s4334_s18  }
  0x31   : > { %p4116_p12 = pnand %p4115_p11, %p4109_p8 }
  0x33   : > { %4119 = shalt.err (!%p4116_p12)
}
  0x34   : > { %s5197_s3 = sld [smem:[#allocation24_spill]]  ;;  %s4131_s16 = scalar_lea.vmem %s4487_s21, 32 }
  0x35   : > { %p4132_p13 = scmp.ne.s32.totalorder %s4487_s21, %s4131_s16  ;;  %p4139_p5 = scmp.lt.s32.totalorder %s4487_s21, %s4487_s21 }
  0x36   : > { %p4140_p9 = scmp.lt.s32.totalorder %s4131_s16, %s4131_s16 }
  0x37   : > { %p4134_p0 = pnand %p4132_p13, %p4491_p7 }
  0x38   : > { %p4141_p8 = por %p4140_p9, %p4139_p5 }
  0x39   : > { %p4135_p2 = pneg %p4134_p0 }
  0x3a   : > { %3906 = dma.hbm_to_vmem [thread:$0]  (!%p4483_p6), %s5197_s3, 16, %s467_s19, [#allocation9]  }
  0x3b   : > { %p4142_p10 = pnand %p4141_p8, %p4135_p2 }
  0x3d   : > { %4145 = shalt.err (!%p4142_p10)
}
  0x3e   : > { %s4335_s15 = smov 16   ;;  %s4336_s13 = smov 1  }
  0x3f   : > { %s5198_s6 = sld [smem:[#allocation26_spill]]  ;;  %s4337_s29 = smov [#allocation7]  }
  0x40   : > { %s455_s19 = sshll.u32 %s4337_s29, 4  ;;  %s4338_s20 = smov [#allocation10]   ;;  %s456_s19 = int_to_ptr.vmem [resolvable:$true] %s455_s19 }
  0x41   : > { %s476_s23 = sshll.u32 %s4338_s20, 4  ;;  %s4157_s16 = scalar_lea.vmem %s456_s19, 16  ;;  %s477_s23 = int_to_ptr.vmem [resolvable:$true] %s476_s23 }
  0x42   : > { %p4158_p11 = scmp.ne.s32.totalorder %s456_s19, %s4157_s16  ;;  %s4164_s28 = scalar_lea.vmem %s456_s19, 32 }
  0x43   : > { %p4165_p0 = scmp.lt.s32.totalorder %s456_s19, %s456_s19  ;;  %p4166_p2 = scmp.lt.s32.totalorder %s4164_s28, %s4157_s16 }
  0x44   : > { %p4160_p12 = pnand %p4158_p11, %p4491_p7 }
  0x45   : > { %3912 = dma.hbm_to_vmem [thread:$0]  (!%p4483_p6), %s5198_s6, 32, %s4487_s21, [#allocation12], %s4335_s15, %s4335_s15, %s4336_s13  }
  0x46   : > { %p4161_p13 = pneg %p4160_p12  ;;  %p4167_p5 = por %p4166_p2, %p4165_p0 }
  0x48   : > { %p4168_p9 = pnand %p4167_p5, %p4161_p13 }
  0x4a   : > { %4171 = shalt.err (!%p4168_p9)
}
  0x4b   : > { %s5199_s2 = sld [smem:[#allocation23_spill]]  ;;  %s4183_s17 = scalar_lea.vmem %s477_s23, 256 }
  0x4c   : > { %p4184_p8 = scmp.ne.s32.totalorder %s477_s23, %s4183_s17  ;;  %p4191_p12 = scmp.lt.s32.totalorder %s477_s23, %s477_s23 }
  0x4d   : > { %p4192_p4 = scmp.lt.s32.totalorder %s4183_s17, %s4183_s17 }
  0x4e   : > { %p4186_p10 = pnand %p4184_p8, %p4491_p7 }
  0x4f   : > { %p4193_p1 = por %p4192_p4, %p4191_p12 }
  0x50   : > { %p4187_p11 = pneg %p4186_p10 }
  0x51   : > { %3903 = dma.hbm_to_vmem [thread:$0]  (!%p4483_p6), %s5199_s2, 16, %s456_s19, [#allocation6]  }
  0x52   : > { %p4194_p3 = pnand %p4193_p1, %p4187_p11 }
  0x54   : > { %4197 = shalt.err (!%p4194_p3)
}
  0x55   : > { %s5200_s28 = smov 128   ;;  %s5201_s4 = sld [smem:[#allocation25_spill]] }
  0x56   : > { %s4339_s19 = smov [#allocation13]  }
  0x57   : > { %s508_s16 = sshll.u32 %s4339_s19, 4  ;;  %s509_s16 = int_to_ptr.vmem [resolvable:$true] %s508_s16 }
  0x58   : > { %s4209_s14 = scalar_lea.vmem %s509_s16, 32  ;;  %p4217_p1 = scmp.lt.s32.totalorder %s509_s16, %s509_s16 }
  0x59   : > { %p4210_p13 = scmp.ne.s32.totalorder %s509_s16, %s4209_s14  ;;  %p4218_p3 = scmp.lt.s32.totalorder %s4209_s14, %s4209_s14 }
  0x5b   : > { %3909 = dma.hbm_to_vmem [thread:$0]  (!%p4483_p6), %s5201_s4, 256, %s477_s23, [#allocation9], %s5200_s28, %s5200_s28, %s4334_s18  }
  0x5c   : > { %p4212_p0 = pnand %p4210_p13, %p4491_p7  ;;  %p4219_p2 = por %p4218_p3, %p4217_p1 }
  0x5e   : > { %p4213_p4 = pneg %p4212_p0 }
  0x60   : > { %p4220_p5 = pnand %p4219_p2, %p4213_p4 }
  0x62   : > { %4223 = shalt.err (!%p4220_p5)
}
  0x63   : > { %s5202_s8 = sld [smem:[#allocation27_spill]]  ;;  %s3422_s1 = sadd.s32 4294967294, %s4328_s27  }
  0x64   : > { %s4556_s22 = sadd.s32 1, %s4328_s27   ;;  %s43_s17 = sadd.s32 1, %s4324_s26 }
  0x65   : > { %s40_s23 = ssub.s32 %s4328_s27, %s4556_s22  ;;  %p50_p9 = scmp.ne.s32.totalorder %s4324_s26, %s4320_s25 }
  0x66   : > { %p41_p7 = scmp.eq.s32.totalorder %s40_s23, 0  ;;  %p51_p8 = scmp.eq.s32.totalorder %s4328_s27, 0 }
  0x67   : > { %p56_p10 = scmp.ne.s32.totalorder %s4320_s25, %s4316_s24  ;;  %p5205_p12 = scmp.eq.s32.totalorder %s4469_s0, 0 }
  0x68   : > { %s4567_s28 = scalar_select %p41_p7, %s4324_s26, %s43_s17  }
  0x69   : > { %3915 = dma.hbm_to_vmem [thread:$0]  (!%p4483_p6), %s5202_s8, 32, %s509_s16, [#allocation12], %s4335_s15, %s4335_s15, %s4336_s13  }
  0x6a   : > { %5203 = sst [smem:[#allocation20_spill]] %s4567_s28  ;;  %p4569_p11 = por %p51_p8, %p50_p9 }
  0x6b   : > { %p4575_p6 = por %p5205_p12, %p56_p10  ;;  %p416_p13 = scmp.eq.s32.totalorder %s4469_s0, 1 }
  0x6c   : > { %p422_p0 = scmp.eq.s32.totalorder %s3422_s1, 1  ;;  %p3930_p4 = scmp.lt.s32.totalorder %s4328_s27, 2 }
  0x6d   : > { %s5206_s15 = scalar_select %p4575_p6, 1, 0 }
  0x6e   : > { %s546_s13 = sand.u32 1, %s4324_s26   ;;  %p4582_p1 = por %p416_p13, %p50_p9 }
  0x6f   : > { %p4586_p3 = por %p422_p0, %p56_p10  ;;  %s3431_s16 = sshll.u32 %s546_s13, 3 }
  0x70   : > { %s5207_s20 = scalar_select %p4582_p1, 1, 0 }
  0x71   : > { %s5208_s19 = scalar_select %p4586_p3, 1, 0 }
  0x72   : > { %s3432_s14 = sshll.u32 %s4328_s27, 7  ;;  %s5209_s23 = sld [smem:[#allocation21_spill]] }
  0x73   : > { %s550_s1 = scalar_lea.vmem [#allocation2], %s3431_s16  ;;  %p4598_p2 = pnand %p3930_p4, %p4569_p11 }
  0x74   : > { %s557_s2 = sshll.u32 %s550_s1, 4  ;;  %s547_s4 = scalar_lea.sflag [#allocation3], %s546_s13  ;;  %s558_s2 = int_to_ptr.vmem [resolvable:$true] %s557_s2 }
  0x75   : > { %p4226_p7 = pneg %p4598_p2 }
  0x78   : > { %s4594_s17 = scalar_lea.hbm %s5209_s23, %s3432_s14  ;;  %s4229_s18 = scalar_lea.hbm %s5209_s23, 256 }
  0x79   : > { %s4224_s6 = scalar_lea.hbm %s4594_s17, 128  ;;  %p4230_p10 = scmp.lt.s32.totalorder %s4594_s17, %s5209_s23 }
  0x7a   : > { %p4225_p5 = scmp.ne.s32.totalorder %s4594_s17, %s4224_s6  ;;  %p4231_p11 = scmp.lt.s32.totalorder %s4229_s18, %s4224_s6 }
  0x7c   : > { %p4227_p9 = pnand %p4226_p7, %p4225_p5  ;;  %p4232_p12 = por %p4231_p11, %p4230_p10 }
  0x7e   : > { %p4228_p8 = pneg %p4227_p9 }
  0x80   : > { %p4233_p13 = pnand %p4232_p12, %p4228_p8 }
  0x82   : > { %4236 = shalt.err (!%p4233_p13)
}
  0x83   : > { %s4237_s29 = scalar_lea.vmem %s558_s2, 128  ;;  %s4340_s13 = smov [#allocation2]  }
  0x84   : > { %p4238_p0 = scmp.ne.s32.totalorder %s558_s2, %s4237_s29  ;;  %s4242_s8 = sshll.u32 %s4340_s13, 4  ;;  %s4243_s8 = int_to_ptr.vmem [resolvable:$false] %s4242_s8 }
  0x85   : > { %s4244_s28 = scalar_lea.vmem %s4243_s8, 256  ;;  %p4245_p5 = scmp.lt.s32.totalorder %s558_s2, %s4243_s8 }
  0x86   : > { %p4240_p4 = pnand %p4238_p0, %p4226_p7  ;;  %p4246_p9 = scmp.lt.s32.totalorder %s4244_s28, %s4237_s29 }
  0x88   : > { %p4241_p3 = pneg %p4240_p4  ;;  %p4247_p1 = por %p4246_p9, %p4245_p5 }
  0x8a   : > { %p4248_p6 = pnand %p4247_p1, %p4241_p3 }
  0x8c   : > { %4251 = shalt.err (!%p4248_p6)
}
  0x8d   : > { %3919 = dma.hbm_to_vmem [thread:$0]  (!%p4598_p2), %s4594_s17, 128, %s558_s2, %s547_s4  }
  0x8e   : > { %p5211_p8 = scmp.ne.s32.totalorder %s5193_s30, 0 }
  0x8f   : > { %s4619_s6 = sand.u32 (!%p5211_p8), 1, %s4320_s25   ;;  %p5212_p7 = scmp.ne.s32.totalorder (!%p5211_p8), %s5206_s15, 0 }
  0x90   : > { %566 = sbr.rel (%p5211_p8) target bundleno = 7799 (0x1e77), region = 88  ;;  %s3434_s14 = sshll.u32 (!%p5211_p8), %s4619_s6, 3 }
  0x91   : > { %s569_s21 = scalar_lea.sflag (!%p5211_p8), [#allocation3], %s4619_s6  ;;  %s572_s8 = scalar_lea.vmem (!%p5211_p8), [#allocation2], %s3434_s14 }
  0x95   : > { %4295 = dma.done.wait (%p5212_p7), %s569_s21, 128  }
  0x96   : > { %4297 = vsyncadd (%p5212_p7), %s569_s21, 4294967168  ;;  %p5213_p6 = scmp.eq.s32.totalorder %s4469_s0, 0 }
  0x98   : > { %4299 = dma.done.wait (%p5213_p6), [#allocation6], 272   ;;  %p5214_p1 = pmov %p5213_p6 }
  0x9a   : > { %4301 = vsyncadd (%p5214_p1), [#allocation6], 4294967024  ;;  %p5215_p3 = pmov %p5214_p1 }
  0x9b   : > { %p5216_p2 = pmov %p5214_p1 }
  0x9c   : > { %4303 = dma.done.wait (%p5215_p3), [#allocation9], 272  }
  0x9d   : > { %4305 = vsyncadd (%p5216_p2), [#allocation9], 4294967024  ;;  %p5217_p10 = pmov %p5214_p1 }
  0x9e   : > { %p5218_p11 = pmov %p5214_p1 }
  0x9f   : > { %4307 = dma.done.wait (%p5217_p10), [#allocation12], 64  }
  0xa0   : > { %4309 = vsyncadd (%p5218_p11), [#allocation12], 4294967232  ;;  %v4341_v0 = vmov 0.0   ;;  %vm4342_vm0 = vmmov 0   ;;  %vm660_vm1 = vcmask 1043456   ;;  %v647_v2 = vld [vmem:[#allocation5] sm:$0xff] }
  0xa1   : > { %3649 = vmatprep.subr.mxu0 %v4341_v0  ;;  %3653 = vmatprep.mubr.msk.f32.mxu0 %vm4342_vm0, %v4341_v0  ;;  %v648_v1 = vld [vmem:[#allocation5 + $0x8] sm:$0xf]  ;;  %v646_v3 = vld [vmem:[%s572_s8] sm:$0xff]  ;;  %vm656_vm2 = vcmask 97280   ;;  %v753_v5 = vld [vmem:[%s5138_s5 + $0x10] sm:$0xff]  ;;  %vm740_vm3 = vcmask 1046528  }
  0xa2   : > { %3650 = vmatpush3.msk.msra.mxu0 %vm660_vm1, %v648_v1  ;;  %v754_v4 = vld [vmem:[%s5138_s5 + $0x18] sm:$0xff]  ;;  %v752_v6 = vld [vmem:[%s5138_s5 + $0x8] sm:$0xff]  ;;  %v751_v7 = vld [vmem:[%s5138_s5] sm:$0xff]  ;;  %vm749_vm4 = vcmask 1040384   ;;  %vm762_vm5 = vcmask 261120   ;;  %vm849_vm6 = vcmask 64512  }
  0xa3   : > { %3651 = vmatprep.subr.mxu0 %v4341_v0  ;;  %3656 = vmatprep.subr.mxu1 %v754_v4  ;;  %v734_v8 = vld [vmem:[#allocation10] sm:$0xff]  ;;  %v735_v9 = vld [vmem:[#allocation10 + $0x8] sm:$0x1]  ;;  %v3441_v12 = vld [vmem:[#allocation7] ss:$0 sm:$0xff]  ;;  %s4343_s16 = smov 88  }
  0xa4   : > { %3652 = vmatpush3.msra.mxu0 %v647_v2  ;;  %3657 = vmatpush3.msra.mxu1 %v754_v4  ;;  %v741_v10 = vrot.slane %v734_v8, 1  ;;  %v742_v11 = vrot.slane %v735_v9, 1  ;;  %v736_v15 = vld [vmem:[#allocation8] sm:$0x1]  ;;  %v3444_v22 = vld [vmem:[#allocation11] ss:$0 sm:$0xff] }
  0xa5   : > { %3654 = vmatmul.mubr.msk.f32.vlgmr.msra.gmra.mxu0 %vm656_vm2, %v646_v3  ;;  %3658 = vmatprep.subr.mxu1 %v753_v5  ;;  %v737_v19 = vadd.f32 %v736_v15, %v734_v8  ;;  %s4344_s1 = smov 96   ;;  %s4345_s29 = smov 120   ;;  %vm939_vm7 = vcmask 65536   ;;  %vm935_vm8 = vcmask 72704   ;;  %vm1682_vm9 = vcmask 130048  }
  0xa6   : > { %3659 = vmatpush3.msra.mxu1 %v753_v5  ;;  %v743_v14 = vsel %vm740_vm3, %v741_v10, %v742_v11  ;;  %s4346_s13 = smov 64   ;;  %s5179_s14 = smov 56   ;;  %vm1685_vm10 = vcmask 195584   ;;  %vm1787_vm11 = vcmask 253952   ;;  %vm3284_vm12 = vcmask 73728  }
  0xa7   : > { %3660 = vmatprep.subr.mxu1 %v752_v6  ;;  %s5177_s21 = smov 80   ;;  %s5175_s8 = smov 112  }
  0xa8   : > { %3661 = vmatpush3.msra.mxu1 %v752_v6  ;;  %s5171_s2 = smov 48   ;;  %s5169_s3 = smov 72  }
  0xa9   : > { %3662 = vmatprep.subr.mxu1 %v751_v7  ;;  %s5167_s4 = smov 104   ;;  %s5165_s30 = smov 40  }
  0xaa   : > { %3663 = vmatpush3.msra.mxu1 %v751_v7  ;;  %s5163_s28 = smov 8   ;;  %s5161_s15 = smov 16  }
  0xab   : > { %s5173_s17 = smov 24   ;;  %p5234_p13 = scmp.ne.s32.totalorder %s5207_s20, 0 }
 0x165   : > { %v730_v13 = vpop.f32.mrf.mxu0 }
 0x166   : > { %v731_v16 = vadd.f32 %v3441_v12, %v730_v13 }
 0x167   : > { %v3655_v17 = vpop.f32.mrf.mxu0 }
 0x168   : > { %v745_v18 = vadd.f32 %v743_v14, %v731_v16 }
 0x16a   : > { %v4655_v20 = vrot.slane %v745_v18, 7 }
 0x16c   : > { %v4659_v21 = vsel %vm749_vm4, %v737_v19, %v4655_v20 }
 0x16d   : > { %3664 = vmatprep.mubr.msk.f32.mxu1 %vm762_vm5, %v4659_v21 }
 0x16e   : > { %3665 = vmatmul.mubr.msk.f32.vlgmr.msra.gmra.mxu1 %vm762_vm5, %v4655_v20 }
 0x22e   : > { %v3666_v23 = vpop.f32.mrf.mxu1 }
 0x22f   : > { %v4665_v24 = vadd.f32 %v3666_v23, %v3444_v22 }
 0x230   : > { %v834_v25 = vpop.f32.mrf.mxu1 }
 0x231   : > { %v4667_v26 = vadd.f32 %v3444_v22, %v834_v25  ;;  %1053 = vrot.lane.b32.xlu1 %v4665_v24, %s4343_s16  ;;  %847 = vrot.lane.b32.xlu0 %v4665_v24, %s4344_s1 }
 0x233   : > { %3671 = vmatprep.mubr.msk.f32.mxu0 %vm849_vm6, %v4667_v26 }
 0x235   : > { %1051 = vrot.lane.b32.xlu1 %v4667_v26, %s4343_s16  ;;  %845 = vrot.lane.b32.xlu0 %v4667_v26, %s4344_s1 }
 0x239   : > { %1049 = vrot.lane.b32.xlu1 %v4665_v24, %s4345_s29  ;;  %1047 = vrot.lane.b32.xlu0 %v4667_v26, %s4345_s29 }
 0x2a3   : > { %v848_v27 = vpop.permute.xlu0 %847  ;;  %v1054_v28 = vpop.permute.xlu1 %1053 }
 0x2a4   : > { %3667 = vmatprep.subr.msk.mxu0 %vm849_vm6, %v848_v27 }
 0x2a5   : > { %3668 = vmatpush3.xpose.msk.msra.mxu0 %vm849_vm6, %v848_v27 }
 0x2a7   : > { %v846_v29 = vpop.permute.xlu0 %845  ;;  %v1052_v31 = vpop.permute.xlu1 %1051 }
 0x2a8   : > { %3669 = vmatprep.subr.msk.mxu0 %vm849_vm6, %v846_v29 }
 0x2a9   : > { %3670 = vmatpush3.xpose.msk.msra.mxu0 %vm849_vm6, %v846_v29 }
 0x2aa   : > { %3681 = vmatprep.subr.msk.mxu0 %vm849_vm6, %v1054_v28 }
 0x2ab   : > { %v1048_v30 = vpop.permute.xlu0 %1047  ;;  %v1050_v32 = vpop.permute.xlu1 %1049 }
 0x2ac   : > { %3672 = vmatmul.mubr.msk.f32.vlgmr.msra.gmra.mxu0 %vm849_vm6, %v4665_v24 }
 0x2ad   : > { %3682 = vmatpush3.xpose.msk.msra.mxu0 %vm849_vm6, %v1054_v28  ;;  %3685 = vmatprep.mubr.msk.f32.mxu0 %vm849_vm6, %v1048_v30 }
 0x2ae   : > { %3683 = vmatprep.subr.msk.mxu0 %vm849_vm6, %v1052_v31 }
 0x2b1   : > { %3684 = vmatpush3.xpose.msk.msra.mxu0 %vm849_vm6, %v1052_v31 }
 0x2b4   : > { %3686 = vmatmul.mubr.msk.f32.vlgmr.msra.gmra.mxu0 %vm849_vm6, %v1050_v32 }
 0x36c   : > { %v3673_v33 = vpop.f32.mrf.mxu0 }
 0x36d   : > { %v934_v34 = vmul.f32 0.35355338, %v3673_v33 }
 0x36e   : > { %v924_v35 = vpop.f32.mrf.mxu0 }
 0x36f   : > { %v933_v36 = vmul.f32 0.35355338, %v924_v35  ;;  %v940_v37 = vsel %vm939_vm7, %v934_v34, -inf }
 0x370   : > { %941 = vmax.xlane.f32.xlu1 %v940_v37 }
 0x371   : > { %v936_v38 = vsel %vm935_vm8, %v933_v36, -inf }
 0x372   : > { %937 = vmax.xlane.f32.xlu0 %v936_v38 }
 0x374   : > { %v3687_v39 = vpop.f32.mrf.mxu0 }
 0x375   : > { %v1139_v42 = vmul.f32 0.35355338, %v3687_v39 }
 0x376   : > { %v1129_v40 = vpop.f32.mrf.mxu0 }
 0x377   : > { %v1138_v41 = vmul.f32 0.35355338, %v1129_v40  ;;  %v1143_v44 = vsel %vm939_vm7, %v1139_v42, -inf }
 0x379   : > { %v1140_v43 = vsel %vm935_vm8, %v1138_v41, -inf }
 0x37a   : > { %1141 = vmax.xlane.f32.xlu0 %v1140_v43 }
 0x37e   : > { %1144 = vmax.xlane.f32.xlu0 %v1143_v44 }
 0x381   : > { %961 = vrot.lane.b32.xlu1 %v4665_v24, %s4346_s13 }
 0x385   : > { %1164 = vrot.lane.b32.xlu1 %v4665_v24, %s5179_s14 }
 0x389   : > { %1162 = vrot.lane.b32.xlu1 %v4667_v26, %s5179_s14  ;;  %s5225_s14 = smov 72  }
 0x394   : > { %959 = vrot.lane.b32.xlu0 %v4667_v26, %s4346_s13 }
 0x3f9   : > { %v942_v45 = vpop.xlane.xlu1 %941 }
 0x3fa   : > { %v944_v46 = vsub.f32 %v934_v34, %v942_v45 }
 0x3fb   : > { %v938_v47 = vpop.xlane.xlu0 %937 }
 0x3fc   : > { %v947_v48 = vmul.f32 1.442695, %v944_v46  ;;  %v943_v49 = vsub.f32 %v933_v36, %v938_v47 }
 0x3fd   : > { %v962_v50 = vpop.permute.xlu1 %961 }
 0x3fe   : > { %3996 = vpow2.f32 %v947_v48  ;;  %v945_v51 = vmul.f32 1.442695, %v943_v49  ;;  %3674 = vmatprep.subr.msk.mxu1 %vm749_vm4, %v962_v50 }
 0x3ff   : > { %3675 = vmatpush3.msk.msra.mxu1 %vm749_vm4, %v962_v50 }
 0x400   : > { %3998 = vpow2.f32 %v945_v51 }
 0x401   : > { %v1165_v60 = vpop.permute.xlu1 %1164 }
 0x403   : > { %v1142_v52 = vpop.xlane.xlu0 %1141 }
 0x404   : > { %v1146_v1 = vsub.f32 %v1138_v41, %v1142_v52 }
 0x405   : > { %v1163_v5 = vpop.permute.xlu1 %1162 }
 0x406   : > { %v1148_v2 = vmul.f32 1.442695, %v1146_v1 }
 0x407   : > { %v1145_v53 = vpop.xlane.xlu0 %1144 }
 0x408   : > { %v1147_v54 = vsub.f32 %v1139_v42, %v1145_v53 }
 0x40a   : > { %v1150_v55 = vmul.f32 1.442695, %v1147_v54 }
 0x40b   : > { %v3997_v56 = vpop.eup %3996  ;;  %v960_v57 = vpop.permute.xlu0 %959 }
 0x40c   : > { %4000 = vpow2.f32 %v1150_v55  ;;  %3676 = vmatprep.subr.mxu1 %v960_v57  ;;  %v952_v58 = vsel %vm939_vm7, %v3997_v56, 0.0 }
 0x40d   : > { %v3999_v59 = vpop.eup %3998  ;;  %953 = vadd.xlane.f32.xlu0 %v952_v58  ;;  %3677 = vmatpush3.msra.mxu1 %v960_v57  ;;  %4002 = vpow2.f32 %v1148_v2 }
 0x40e   : > { %3688 = vmatprep.subr.msk.mxu1 %vm749_vm4, %v1165_v60  ;;  %v949_v61 = vsel %vm935_vm8, %v3999_v59, 0.0 }
 0x40f   : > { %950 = vadd.xlane.f32.xlu1 %v949_v61 }
 0x419   : > { %v4001_v62 = vpop.eup %4000 }
 0x41a   : > { %v1155_v63 = vsel %vm939_vm7, %v4001_v62, 0.0  ;;  %v4003_v3 = vpop.eup %4002 }
 0x41b   : > { %1156 = vadd.xlane.f32.xlu0 %v1155_v63  ;;  %v1152_v4 = vsel %vm935_vm8, %v4003_v3, 0.0 }
 0x420   : > { %1254 = vrot.lane.b32.xlu1 %v4667_v26, %s5177_s21 }
 0x431   : > { %1256 = vrot.lane.b32.xlu0 %v4665_v24, %s5177_s21 }
 0x435   : > { %1250 = vrot.lane.b32.xlu0 %v4667_v26, %s5175_s8 }
 0x444   : > { %1153 = vadd.xlane.f32.xlu1 %v1152_v4 }
 0x455   : > { %1252 = vrot.lane.b32.xlu1 %v4665_v24, %s5175_s8 }
 0x496   : > { %v954_v6 = vpop.xlane.xlu0 %953 }
 0x497   : > { %4004 = vrcp.f32 %v954_v6 }
 0x498   : > { %v951_v7 = vpop.xlane.xlu1 %950 }
 0x499   : > { %4006 = vrcp.f32 %v951_v7 }
 0x49c   : > { %v1255_v14 = vpop.permute.xlu1 %1254 }
 0x4a4   : > { %v4005_v8 = vpop.eup %4004  ;;  %v1157_v10 = vpop.xlane.xlu0 %1156 }
 0x4a5   : > { %v958_v12 = vmul.f32 %v4005_v8, %v3997_v56  ;;  %4008 = vrcp.f32 %v1157_v10 }
 0x4a6   : > { %v4007_v9 = vpop.eup %4006 }
 0x4a7   : > { %v957_v11 = vmul.f32 %v4007_v9, %v3999_v59 }
 0x4a8   : > { %v1257_v13 = vpop.permute.xlu0 %1256 }
 0x4a9   : > { %3678 = vmatprep.mubr.msk.f32.mxu1 %vm935_vm8, %v957_v11 }
 0x4aa   : > { %3679 = vmatmul.mubr.msk.f32.vlgmr.msra.gmra.mxu1 %vm935_vm8, %v958_v12 }
 0x4ab   : > { %3689 = vmatpush3.msk.msra.mxu1 %vm749_vm4, %v1165_v60 }
 0x4ac   : > { %3690 = vmatprep.subr.mxu1 %v1163_v5  ;;  %v1251_v22 = vpop.permute.xlu0 %1250 }
 0x4ad   : > { %3691 = vmatpush3.msra.mxu1 %v1163_v5 }
 0x4ae   : > { %3695 = vmatprep.subr.msk.mxu1 %vm849_vm6, %v1257_v13 }
 0x4b2   : > { %v4009_v16 = vpop.eup %4008 }
 0x4b3   : > { %v1161_v19 = vmul.f32 %v4009_v16, %v4001_v62 }
 0x4cd   : > { %v1154_v15 = vpop.xlane.xlu1 %1153 }
 0x4ce   : > { %4010 = vrcp.f32 %v1154_v15 }
 0x4d1   : > { %v1253_v23 = vpop.permute.xlu1 %1252 }
 0x4db   : > { %v4011_v17 = vpop.eup %4010 }
 0x4dc   : > { %v1160_v18 = vmul.f32 %v4011_v17, %v4003_v3 }
 0x4de   : > { %3692 = vmatprep.mubr.msk.f32.mxu1 %vm935_vm8, %v1160_v18 }
 0x4df   : > { %3693 = vmatmul.mubr.msk.f32.vlgmr.msra.gmra.mxu1 %vm935_vm8, %v1161_v19 }
 0x4e0   : > { %3696 = vmatpush3.xpose.msk.msra.mxu1 %vm849_vm6, %v1257_v13  ;;  %3699 = vmatprep.mubr.msk.f32.mxu1 %vm849_vm6, %v1251_v22  ;;  %v1690_v22 = vld [vmem:[%s5140_s7 + $0x10] sm:$0xff] }
 0x4e1   : > { %3697 = vmatprep.subr.msk.mxu1 %vm849_vm6, %v1255_v14 }
 0x4e4   : > { %3698 = vmatpush3.xpose.msk.msra.mxu1 %vm849_vm6, %v1255_v14 }
 0x4e7   : > { %3700 = vmatmul.mubr.msk.f32.vlgmr.msra.gmra.mxu1 %vm849_vm6, %v1253_v23  ;;  %v1689_v23 = vld [vmem:[%s5140_s7 + $0x8] sm:$0xff] }
 0x56a   : > { %v4733_v25 = vpop.f32.mrf.mxu1 }
 0x56c   : > { %v4735_v27 = vpop.f32.mrf.mxu1 }
 0x59f   : > { %v4737_v28 = vpop.f32.mrf.mxu1 }
 0x5a1   : > { %v4739_v29 = vpop.f32.mrf.mxu1 }
 0x5a7   : > { %v3701_v30 = vpop.f32.mrf.mxu1 }
 0x5a8   : > { %v1342_v31 = vmul.f32 0.35355338, %v3701_v30 }
 0x5a9   : > { %v1332_v32 = vpop.f32.mrf.mxu1 }
 0x5aa   : > { %v1341_v33 = vmul.f32 0.35355338, %v1332_v32  ;;  %v1346_v34 = vsel %vm939_vm7, %v1342_v31, -inf }
 0x5ab   : > { %1347 = vmax.xlane.f32.xlu1 %v1346_v34 }
 0x5ac   : > { %v1343_v35 = vsel %vm935_vm8, %v1341_v33, -inf }
 0x5ad   : > { %1344 = vmax.xlane.f32.xlu0 %v1343_v35 }
 0x5bc   : > { %1367 = vrot.lane.b32.xlu1 %v4665_v24, %s5171_s2 }
 0x5c0   : > { %1459 = vrot.lane.b32.xlu1 %v4665_v24, %s5169_s3 }
 0x5c4   : > { %1457 = vrot.lane.b32.xlu1 %v4667_v26, %s5169_s3 }
 0x5c8   : > { %1455 = vrot.lane.b32.xlu1 %v4665_v24, %s5167_s4 }
 0x634   : > { %v1348_v36 = vpop.xlane.xlu1 %1347 }
 0x635   : > { %v1350_v37 = vsub.f32 %v1342_v31, %v1348_v36 }
 0x636   : > { %v1345_v38 = vpop.xlane.xlu0 %1344 }
 0x637   : > { %v1353_v39 = vmul.f32 1.442695, %v1350_v37  ;;  %v1349_v40 = vsub.f32 %v1341_v33, %v1345_v38 }
 0x638   : > { %v1368_v41 = vpop.permute.xlu1 %1367 }
 0x639   : > { %4012 = vpow2.f32 %v1353_v39  ;;  %v1351_v42 = vmul.f32 1.442695, %v1349_v40  ;;  %3702 = vmatprep.subr.msk.mxu0 %vm749_vm4, %v1368_v41 }
 0x63a   : > { %3703 = vmatpush3.msk.msra.mxu0 %vm749_vm4, %v1368_v41 }
 0x63b   : > { %4014 = vpow2.f32 %v1351_v42 }
 0x63c   : > { %v1460_v50 = vpop.permute.xlu1 %1459 }
 0x640   : > { %v1458_v56 = vpop.permute.xlu1 %1457 }
 0x644   : > { %v1456_v57 = vpop.permute.xlu1 %1455 }
 0x646   : > { %v4013_v43 = vpop.eup %4012 }
 0x647   : > { %v1358_v44 = vsel %vm939_vm7, %v4013_v43, 0.0 }
 0x648   : > { %v4015_v45 = vpop.eup %4014  ;;  %1359 = vadd.xlane.f32.xlu0 %v1358_v44 }
 0x649   : > { %v1355_v46 = vsel %vm935_vm8, %v4015_v45, 0.0 }
 0x64c   : > { %1356 = vadd.xlane.f32.xlu0 %v1355_v46 }
 0x662   : > { %1365 = vrot.lane.b32.xlu0 %v4667_v26, %s5171_s2 }
 0x666   : > { %1453 = vrot.lane.b32.xlu0 %v4667_v26, %s5167_s4  ;;  %s5228_s4 = smov 8  }
 0x6d1   : > { %v1360_v47 = vpop.xlane.xlu0 %1359 }
 0x6d2   : > { %4016 = vrcp.f32 %v1360_v47 }
 0x6d5   : > { %v1357_v48 = vpop.xlane.xlu0 %1356 }
 0x6d6   : > { %4018 = vrcp.f32 %v1357_v48 }
 0x6d9   : > { %v1366_v49 = vpop.permute.xlu0 %1365 }
 0x6da   : > { %3704 = vmatprep.subr.mxu0 %v1366_v49 }
 0x6db   : > { %3705 = vmatpush3.msra.mxu0 %v1366_v49 }
 0x6dc   : > { %3709 = vmatprep.subr.msk.mxu0 %vm849_vm6, %v1460_v50 }
 0x6dd   : > { %v1454_v55 = vpop.permute.xlu0 %1453 }
 0x6df   : > { %v4017_v51 = vpop.eup %4016 }
 0x6e0   : > { %v1364_v54 = vmul.f32 %v4017_v51, %v4013_v43  ;;  %v3475_v43 = vld [vmem:[#allocation13] ss:$0 sm:$0xff] }
 0x6e3   : > { %v4019_v52 = vpop.eup %4018 }
 0x6e4   : > { %v1363_v53 = vmul.f32 %v4019_v52, %v4015_v45 }
 0x6e6   : > { %3706 = vmatprep.mubr.msk.f32.mxu0 %vm935_vm8, %v1363_v53 }
 0x6e7   : > { %3707 = vmatmul.mubr.msk.f32.vlgmr.msra.gmra.mxu0 %vm935_vm8, %v1364_v54 }
 0x6e8   : > { %3710 = vmatpush3.xpose.msk.msra.mxu0 %vm849_vm6, %v1460_v50  ;;  %3713 = vmatprep.mubr.msk.f32.mxu0 %vm849_vm6, %v1454_v55 }
 0x6e9   : > { %3711 = vmatprep.subr.msk.mxu0 %vm849_vm6, %v1458_v56 }
 0x6ec   : > { %3712 = vmatpush3.xpose.msk.msra.mxu0 %vm849_vm6, %v1458_v56 }
 0x6ef   : > { %3714 = vmatmul.mubr.msk.f32.vlgmr.msra.gmra.mxu0 %vm849_vm6, %v1456_v57 }
 0x7a7   : > { %v3708_v58 = vpop.f32.mrf.mxu0 }
 0x7a9   : > { %v1444_v59 = vpop.f32.mrf.mxu0 }
 0x7af   : > { %v3715_v60 = vpop.f32.mrf.mxu0 }
 0x7b0   : > { %v1545_v61 = vmul.f32 0.35355338, %v3715_v60 }
 0x7b1   : > { %v1535_v62 = vpop.f32.mrf.mxu0 }
 0x7b2   : > { %v1544_v63 = vmul.f32 0.35355338, %v1535_v62  ;;  %v1549_v1 = vsel %vm939_vm7, %v1545_v61, -inf }
 0x7b3   : > { %1550 = vmax.xlane.f32.xlu1 %v1549_v1 }
 0x7b4   : > { %v1546_v2 = vsel %vm935_vm8, %v1544_v63, -inf }
 0x7b5   : > { %1547 = vmax.xlane.f32.xlu0 %v1546_v2 }
 0x7c4   : > { %1570 = vrot.lane.b32.xlu1 %v4665_v24, %s5165_s30 }
 0x7c8   : > { %1658 = vrot.lane.b32.xlu1 %v4739_v29, %s5163_s28 }
 0x7cc   : > { %1660 = vrot.lane.b32.xlu1 %v4737_v28, %s5163_s28  ;;  %v1688_v28 = vld [vmem:[%s5140_s7] sm:$0xff] }
 0x7d0   : > { %1668 = vrot.lane.b32.xlu1 %v3708_v58, %s5161_s15 }
 0x83c   : > { %v1551_v3 = vpop.xlane.xlu1 %1550 }
 0x83d   : > { %v1553_v4 = vsub.f32 %v1545_v61, %v1551_v3 }
 0x83e   : > { %v1548_v5 = vpop.xlane.xlu0 %1547 }
 0x83f   : > { %v1556_v6 = vmul.f32 1.442695, %v1553_v4  ;;  %v1552_v7 = vsub.f32 %v1544_v63, %v1548_v5  ;;  %v1836_v4 = vld [vmem:[%s5144_s11 + $0x18] sm:$0xff] }
 0x840   : > { %v1571_v8 = vpop.permute.xlu1 %1570  ;;  %3734 = vmatprep.subr.mxu0 %v1836_v4 }
 0x841   : > { %4020 = vpow2.f32 %v1556_v6  ;;  %v1554_v9 = vmul.f32 1.442695, %v1552_v7  ;;  %3716 = vmatprep.subr.msk.mxu1 %vm749_vm4, %v1571_v8  ;;  %3735 = vmatpush3.msra.mxu0 %v1836_v4  ;;  %v1835_v6 = vld [vmem:[%s5144_s11 + $0x10] sm:$0xff] }
 0x842   : > { %3717 = vmatpush3.msk.msra.mxu1 %vm749_vm4, %v1571_v8  ;;  %3736 = vmatprep.subr.mxu0 %v1835_v6  ;;  %v1834_v8 = vld [vmem:[%s5144_s11 + $0x8] sm:$0xff] }
 0x843   : > { %4022 = vpow2.f32 %v1554_v9  ;;  %3737 = vmatpush3.msra.mxu0 %v1835_v6 }
 0x844   : > { %v1659_v31 = vpop.permute.xlu1 %1658  ;;  %3738 = vmatprep.subr.mxu0 %v1834_v8 }
 0x845   : > { %v1680_v35 = vsel %vm849_vm6, %v4735_v27, %v1659_v31  ;;  %3739 = vmatpush3.msra.mxu0 %v1834_v8 }
 0x848   : > { %v1661_v32 = vpop.permute.xlu1 %1660 }
 0x849   : > { %v1681_v37 = vsel %vm849_vm6, %v4733_v25, %v1661_v32 }
 0x84c   : > { %v1669_v33 = vpop.permute.xlu1 %1668 }
 0x84d   : > { %v1684_v40 = vsel %vm1682_vm9, %v1681_v37, %v1669_v33 }
 0x84e   : > { %v4021_v24 = vpop.eup %4020 }
 0x84f   : > { %v1561_v10 = vsel %vm939_vm7, %v4021_v24, 0.0 }
 0x850   : > { %v4023_v11 = vpop.eup %4022  ;;  %1562 = vadd.xlane.f32.xlu0 %v1561_v10 }
 0x851   : > { %v1558_v12 = vsel %vm935_vm8, %v4023_v11, 0.0 }
 0x854   : > { %1559 = vadd.xlane.f32.xlu0 %v1558_v12 }
 0x86a   : > { %1568 = vrot.lane.b32.xlu0 %v4667_v26, %s5165_s30  ;;  %v1691_v26 = vld [vmem:[%s5140_s7 + $0x18] sm:$0xff] }
 0x86e   : > { %1666 = vrot.lane.b32.xlu0 %v1444_v59, %s5161_s15 }
 0x8d9   : > { %v1563_v13 = vpop.xlane.xlu0 %1562 }
 0x8da   : > { %4024 = vrcp.f32 %v1563_v13  ;;  %v1782_v13 = vld [vmem:[%s5142_s9] sm:$0xff] }
 0x8dd   : > { %v1560_v14 = vpop.xlane.xlu0 %1559 }
 0x8de   : > { %4026 = vrcp.f32 %v1560_v14  ;;  %v1783_v14 = vld [vmem:[%s5142_s9 + $0x8] sm:$0x1] }
 0x8e1   : > { %v1569_v15 = vpop.permute.xlu0 %1568 }
 0x8e2   : > { %3718 = vmatprep.subr.mxu1 %v1569_v15 }
 0x8e3   : > { %3719 = vmatpush3.msra.mxu1 %v1569_v15 }
 0x8e4   : > { %3723 = vmatprep.subr.mxu1 %v1691_v26 }
 0x8e5   : > { %v1667_v34 = vpop.permute.xlu0 %1666 }
 0x8e6   : > { %v1683_v38 = vsel %vm1682_vm9, %v1680_v35, %v1667_v34 }
 0x8e7   : > { %v4025_v16 = vpop.eup %4024 }
 0x8e8   : > { %v1567_v19 = vmul.f32 %v4025_v16, %v4021_v24  ;;  %v1833_v24 = vld [vmem:[%s5144_s11] sm:$0xff] }
 0x8e9   : > { %3740 = vmatprep.subr.mxu0 %v1833_v24 }
 0x8ea   : > { %3741 = vmatpush3.msra.mxu0 %v1833_v24 }
 0x8eb   : > { %v4027_v17 = vpop.eup %4026 }
 0x8ec   : > { %v1566_v18 = vmul.f32 %v4027_v17, %v4023_v11 }
 0x8ee   : > { %3720 = vmatprep.mubr.msk.f32.mxu1 %vm935_vm8, %v1566_v18  ;;  %v1784_v18 = vld [vmem:[%s5143_s10] sm:$0xff] }
 0x8ef   : > { %3721 = vmatmul.mubr.msk.f32.vlgmr.msra.gmra.mxu1 %vm935_vm8, %v1567_v19  ;;  %v1785_v19 = vld [vmem:[%s5143_s10 + $0x8] sm:$0x1] }
 0x8f0   : > { %3724 = vmatpush3.msra.mxu1 %v1691_v26 }
 0x8f1   : > { %3725 = vmatprep.subr.mxu1 %v1690_v22 }
 0x8f2   : > { %3726 = vmatpush3.msra.mxu1 %v1690_v22 }
 0x8f3   : > { %3727 = vmatprep.subr.mxu1 %v1689_v23 }
 0x8f4   : > { %3728 = vmatpush3.msra.mxu1 %v1689_v23 }
 0x8f5   : > { %3729 = vmatprep.subr.mxu1 %v1688_v28 }
 0x8f6   : > { %3730 = vmatpush3.msra.mxu1 %v1688_v28 }
 0x9af   : > { %v3722_v29 = vpop.f32.mrf.mxu1 }
 0x9b0   : > { %1676 = vrot.lane.b32.xlu1 %v3722_v29, %s5173_s17  ;;  %v3478_v29 = vld [vmem:[%s5145_s12] ss:$0 sm:$0xff] }
 0x9b1   : > { %v1647_v30 = vpop.f32.mrf.mxu1 }
 0x9b2   : > { %1674 = vrot.lane.b32.xlu0 %v1647_v30, %s5173_s17 }
 0xa22   : > { %v1677_v36 = vpop.permute.xlu1 %1676 }
 0xa23   : > { %v1687_v42 = vsel %vm1685_vm10, %v1684_v40, %v1677_v36 }
 0xa24   : > { %v1675_v39 = vpop.permute.xlu0 %1674 }
 0xa25   : > { %v1686_v41 = vsel %vm1685_vm10, %v1683_v38, %v1675_v39 }
 0xa26   : > { %3731 = vmatprep.mubr.msk.f32.mxu1 %vm762_vm5, %v1686_v41 }
 0xa27   : > { %3732 = vmatmul.mubr.msk.f32.vlgmr.msra.gmra.mxu1 %vm762_vm5, %v1687_v42 }
 0xae7   : > { %v3733_v27 = vpop.f32.mrf.mxu1 }
 0xae8   : > { %v1777_v44 = vadd.f32 %v3733_v27, %v3475_v43 }
 0xae9   : > { %v1771_v45 = vpop.f32.mrf.mxu1 }
 0xaea   : > { %v1781_v46 = vadd.f32 %v1777_v44, %v4655_v20  ;;  %v1772_v25 = vadd.f32 %v3475_v43, %v1771_v45 }
 0xaec   : > { %v1780_v47 = vadd.f32 %v1772_v25, %v4659_v21  ;;  %v1788_v49 = vsel %vm1787_vm11, %v1781_v46, 0.0 }
 0xaee   : > { %v1786_v48 = vsel %vm762_vm5, %v1780_v47, 0.0 }
 0xaef   : > { %v1789_v50 = vadd.f32 %v1788_v49, %v1786_v48 }
 0xaf1   : > { %1790 = vadd.xlane.f32.xlu0 %v1789_v50 }
 0xb7a   : > { %v1791_v51 = vpop.xlane.xlu0 %1790 }
 0xb7b   : > { %v1792_v52 = vrot.slane %v1791_v51, 4 }
 0xb7d   : > { %v1793_v53 = vadd.f32 %v1792_v52, %v1791_v51 }
 0xb7f   : > { %v1794_v54 = vrot.slane %v1793_v53, 2 }
 0xb81   : > { %v1795_v55 = vadd.f32 %v1794_v54, %v1793_v53 }
 0xb83   : > { %v1796_v56 = vrot.slane %v1795_v55, 1 }
 0xb85   : > { %v1797_v57 = vadd.f32 %v1796_v56, %v1795_v55 }
 0xb87   : > { %3845 = vpush %v1797_v57  ;;  %v3484_v57 = vld [vmem:[%s5138_s5 + $0x38] sm:$0xff] }
 0xb88   : > { %3745 = vmatprep.subr.mxu1 %v3484_v57 }
 0xb89   : > { %3746 = vmatpush3.msra.mxu1 %v3484_v57 }
 0xbb8   : > { %s3846_s2 = spop %3845 }
 0xbb9   : > { %s1801_s3 = smul.f32 0.0034722222, %s3846_s2 }
 0xbbb   : > { %v1802_v20 = vstv %s1801_s3  ;;  %s5227_s3 = smov 40  }
 0xbbc   : > { %v1803_v58 = vsub.f32 %v1780_v47, %v1802_v20  ;;  %v1804_v59 = vsub.f32 %v1781_v46, %v1802_v20 }
 0xbbe   : > { %v1805_v21 = vmul.f32 %v1803_v58, %v1803_v58  ;;  %v1806_v60 = vmul.f32 %v1804_v59, %v1804_v59 }
 0xbc0   : > { %v1807_v61 = vsel %vm762_vm5, %v1805_v21, 0.0  ;;  %v1808_v62 = vsel %vm1787_vm11, %v1806_v60, 0.0  ;;  %v3482_v21 = vld [vmem:[%s5138_s5 + $0x28] sm:$0xff] }
 0xbc1   : > { %v1809_v63 = vadd.f32 %v1808_v62, %v1807_v61  ;;  %v3481_v61 = vld [vmem:[%s5138_s5 + $0x20] sm:$0xff] }
 0xbc3   : > { %1810 = vadd.xlane.f32.xlu1 %v1809_v63 }
 0xc4c   : > { %v1811_v1 = vpop.xlane.xlu1 %1810 }
 0xc4d   : > { %v1812_v2 = vrot.slane %v1811_v1, 4 }
 0xc4f   : > { %v1813_v3 = vadd.f32 %v1812_v2, %v1811_v1 }
 0xc51   : > { %v1814_v5 = vrot.slane %v1813_v3, 2 }
 0xc53   : > { %v1815_v7 = vadd.f32 %v1814_v5, %v1813_v3 }
 0xc55   : > { %v1816_v9 = vrot.slane %v1815_v7, 1 }
 0xc57   : > { %v1817_v10 = vadd.f32 %v1816_v9, %v1815_v7 }
 0xc59   : > { %3847 = vpush %v1817_v10 }
 0xc8a   : > { %s3848_s30 = spop %3847 }
 0xc8b   : > { %s1821_s28 = smul.f32 0.0034722222, %s3848_s30  ;;  %s5219_s30 = sld [smem:[#allocation28_spill]] }
 0xc8d   : > { %s1822_s15 = sadd.f32 1e-05, %s1821_s28  ;;  %s5229_s28 = smov 16  }
 0xc8f   : > { %v1823_v11 = vstv %s1822_s15 }
 0xc90   : > { %4028 = vrsqrt.f32 %v1823_v11 }
 0xc91   : > { %v1929_v2 = vld [vmem:[%s5219_s30] sm:$0xff]  ;;  %v1930_v3 = vld [vmem:[%s5219_s30 + $0x8] sm:$0x1] }
 0xc9d   : > { %v4029_v12 = vpop.eup %4028 }
 0xc9e   : > { %3849 = vpush %v4029_v12  ;;  %v3485_v12 = vld [vmem:[#allocation11 + $0x1] ss:$0 sm:$0xff] }
 0xccf   : > { %s3850_s18 = spop %3849 }
 0xcd0   : > { %v1826_v15 = vstv %s3850_s18 }
 0xcd1   : > { %v1827_v16 = vmul.f32 %v1826_v15, %v1803_v58  ;;  %v1828_v17 = vmul.f32 %v1826_v15, %v1804_v59  ;;  %v3483_v58 = vld [vmem:[%s5138_s5 + $0x30] sm:$0xff] }
 0xcd2   : > { %3747 = vmatprep.subr.mxu1 %v3483_v58 }
 0xcd3   : > { %v1829_v26 = vmul.f32 %v1827_v16, %v1782_v13  ;;  %v1830_v22 = vmul.f32 %v1828_v17, %v1783_v14  ;;  %3748 = vmatpush3.msra.mxu1 %v3483_v58 }
 0xcd4   : > { %3749 = vmatprep.subr.mxu1 %v3482_v21 }
 0xcd5   : > { %v1831_v23 = vadd.f32 %v1829_v26, %v1784_v18  ;;  %v1832_v28 = vadd.f32 %v1830_v22, %v1785_v19  ;;  %3750 = vmatpush3.msra.mxu1 %v3482_v21 }
 0xcd6   : > { %3751 = vmatprep.subr.mxu1 %v3481_v61 }
 0xcd7   : > { %3742 = vmatprep.mubr.msk.f32.mxu0 %vm762_vm5, %v1831_v23  ;;  %3752 = vmatpush3.msra.mxu1 %v3481_v61 }
 0xcd8   : > { %3743 = vmatmul.mubr.msk.f32.vlgmr.msra.gmra.mxu0 %vm762_vm5, %v1832_v28 }
 0xd98   : > { %v3744_v30 = vpop.f32.mrf.mxu0 }
 0xd99   : > { %v1922_v31 = vadd.f32 %v3744_v30, %v3478_v29 }
 0xd9a   : > { %v1916_v32 = vpop.f32.mrf.mxu0 }
 0xd9b   : > { %v1926_v33 = vmax.f32 %v1922_v31, 0.0  ;;  %v1917_v34 = vadd.f32 %v3478_v29, %v1916_v32 }
 0xd9d   : > { %v1928_v35 = vadd.f32 %v1926_v33, %v1832_v28  ;;  %v1925_v36 = vmax.f32 %v1917_v34, 0.0 }
 0xd9f   : > { %v1927_v37 = vadd.f32 %v1925_v36, %v1831_v23  ;;  %v1934_v39 = vsel %vm1787_vm11, %v1928_v35, 0.0 }
 0xda1   : > { %v1933_v38 = vsel %vm762_vm5, %v1927_v37, 0.0 }
 0xda2   : > { %v1935_v40 = vadd.f32 %v1934_v39, %v1933_v38 }
 0xda4   : > { %1936 = vadd.xlane.f32.xlu0 %v1935_v40 }
 0xe2d   : > { %v1937_v41 = vpop.xlane.xlu0 %1936 }
 0xe2e   : > { %v1938_v42 = vrot.slane %v1937_v41, 4 }
 0xe30   : > { %v1939_v43 = vadd.f32 %v1938_v42, %v1937_v41 }
 0xe32   : > { %v1940_v27 = vrot.slane %v1939_v43, 2 }
 0xe34   : > { %v1941_v44 = vadd.f32 %v1940_v27, %v1939_v43 }
 0xe36   : > { %v1942_v45 = vrot.slane %v1941_v44, 1 }
 0xe38   : > { %v1943_v46 = vadd.f32 %v1942_v45, %v1941_v44 }
 0xe3a   : > { %3851 = vpush %v1943_v46 }
 0xe6b   : > { %s3852_s17 = spop %3851 }
 0xe6c   : > { %s1947_s15 = smul.f32 0.0034722222, %s3852_s17 }
 0xe6e   : > { %v1948_v25 = vstv %s1947_s15 }
 0xe6f   : > { %v1949_v47 = vsub.f32 %v1927_v37, %v1948_v25  ;;  %v1950_v48 = vsub.f32 %v1928_v35, %v1948_v25 }
 0xe71   : > { %v1951_v49 = vmul.f32 %v1949_v47, %v1949_v47  ;;  %v1952_v50 = vmul.f32 %v1950_v48, %v1950_v48 }
 0xe73   : > { %v1953_v51 = vsel %vm762_vm5, %v1951_v49, 0.0  ;;  %v1954_v52 = vsel %vm1787_vm11, %v1952_v50, 0.0 }
 0xe74   : > { %v1955_v53 = vadd.f32 %v1954_v52, %v1953_v51 }
 0xe76   : > { %1956 = vadd.xlane.f32.xlu0 %v1955_v53 }
 0xeff   : > { %v1957_v54 = vpop.xlane.xlu0 %1956 }
 0xf00   : > { %v1958_v55 = vrot.slane %v1957_v54, 4 }
 0xf02   : > { %v1959_v56 = vadd.f32 %v1958_v55, %v1957_v54 }
 0xf04   : > { %v1960_v20 = vrot.slane %v1959_v56, 2 }
 0xf06   : > { %v1961_v59 = vadd.f32 %v1960_v20, %v1959_v56 }
 0xf08   : > { %v1962_v60 = vrot.slane %v1961_v59, 1 }
 0xf0a   : > { %v1963_v62 = vadd.f32 %v1962_v60, %v1961_v59 }
 0xf0c   : > { %3853 = vpush %v1963_v62 }
 0xf3d   : > { %s3854_s17 = spop %3853 }
 0xf3e   : > { %s1967_s15 = smul.f32 0.0034722222, %s3854_s17  ;;  %s5220_s17 = sld [smem:[#allocation29_spill]] }
 0xf40   : > { %s1968_s18 = sadd.f32 1e-05, %s1967_s15 }
 0xf42   : > { %v1969_v63 = vstv %s1968_s18  ;;  %s5232_s18 = sld [smem:[#allocation31_spill]] }
 0xf43   : > { %4030 = vrsqrt.f32 %v1969_v63 }
 0xf44   : > { %v1931_v7 = vld [vmem:[%s5220_s17] sm:$0xff]  ;;  %v1932_v8 = vld [vmem:[%s5220_s17 + $0x8] sm:$0x1] }
 0xf50   : > { %v4031_v1 = vpop.eup %4030 }
 0xf51   : > { %3855 = vpush %v4031_v1 }
 0xf82   : > { %s3856_s2 = spop %3855 }
 0xf83   : > { %v1972_v4 = vstv %s3856_s2  ;;  %s5226_s2 = smov 104  }
 0xf84   : > { %v1973_v5 = vmul.f32 %v1972_v4, %v1949_v47  ;;  %v1974_v6 = vmul.f32 %v1972_v4, %v1950_v48 }
 0xf86   : > { %v1975_v9 = vmul.f32 %v1973_v5, %v1929_v2  ;;  %v1976_v24 = vmul.f32 %v1974_v6, %v1930_v3 }
 0xf88   : > { %v4872_v10 = vadd.f32 %v1975_v9, %v1931_v7  ;;  %v4874_v11 = vadd.f32 %v1976_v24, %v1932_v8 }
 0xf8a   : > { %3753 = vmatprep.mubr.msk.f32.mxu1 %vm762_vm5, %v4872_v10 }
 0xf8b   : > { %3754 = vmatmul.mubr.msk.f32.vlgmr.msra.gmra.mxu1 %vm762_vm5, %v4874_v11 }
0x104b   : > { %v3755_v13 = vpop.f32.mrf.mxu1 }
0x104c   : > { %v4880_v14 = vadd.f32 %v3755_v13, %v3485_v12 }
0x104d   : > { %v2064_v15 = vpop.f32.mrf.mxu1 }
0x104e   : > { %v4882_v16 = vadd.f32 %v3485_v12, %v2064_v15  ;;  %2077 = vrot.lane.b32.xlu1 %v4880_v14, %s4344_s1 }
0x1050   : > { %2075 = vrot.lane.b32.xlu0 %v4882_v16, %s4344_s1  ;;  %3760 = vmatprep.mubr.msk.f32.mxu0 %vm849_vm6, %v4882_v16  ;;  %s5222_s1 = smov 80  }
0x1052   : > { %2280 = vrot.lane.b32.xlu1 %v4880_v14, %s4343_s16 }
0x1054   : > { %2274 = vrot.lane.b32.xlu0 %v4882_v16, %s4345_s29 }
0x1056   : > { %2278 = vrot.lane.b32.xlu1 %v4882_v16, %s4343_s16  ;;  %s5221_s16 = smov 56  }
0x105a   : > { %2276 = vrot.lane.b32.xlu1 %v4880_v14, %s4345_s29  ;;  %s5223_s29 = smov 112  }
0x10c0   : > { %v2078_v17 = vpop.permute.xlu1 %2077 }
0x10c1   : > { %3756 = vmatprep.subr.msk.mxu0 %vm849_vm6, %v2078_v17 }
0x10c2   : > { %3757 = vmatpush3.xpose.msk.msra.mxu0 %vm849_vm6, %v2078_v17  ;;  %v2076_v18 = vpop.permute.xlu0 %2075 }
0x10c3   : > { %3758 = vmatprep.subr.msk.mxu0 %vm849_vm6, %v2076_v18 }
0x10c4   : > { %v2281_v19 = vpop.permute.xlu1 %2280 }
0x10c6   : > { %3759 = vmatpush3.xpose.msk.msra.mxu0 %vm849_vm6, %v2076_v18  ;;  %v2275_v26 = vpop.permute.xlu0 %2274 }
0x10c7   : > { %3770 = vmatprep.subr.msk.mxu0 %vm849_vm6, %v2281_v19 }
0x10c8   : > { %v2279_v22 = vpop.permute.xlu1 %2278 }
0x10c9   : > { %3761 = vmatmul.mubr.msk.f32.vlgmr.msra.gmra.mxu0 %vm849_vm6, %v4880_v14 }
0x10ca   : > { %3771 = vmatpush3.xpose.msk.msra.mxu0 %vm849_vm6, %v2281_v19  ;;  %3774 = vmatprep.mubr.msk.f32.mxu0 %vm849_vm6, %v2275_v26 }
0x10cb   : > { %3772 = vmatprep.subr.msk.mxu0 %vm849_vm6, %v2279_v22 }
0x10cc   : > { %v2277_v23 = vpop.permute.xlu1 %2276 }
0x10ce   : > { %3773 = vmatpush3.xpose.msk.msra.mxu0 %vm849_vm6, %v2279_v22 }
0x10d1   : > { %3775 = vmatmul.mubr.msk.f32.vlgmr.msra.gmra.mxu0 %vm849_vm6, %v2277_v23 }
0x1189   : > { %v3762_v28 = vpop.f32.mrf.mxu0 }
0x118a   : > { %v2163_v29 = vmul.f32 0.35355338, %v3762_v28 }
0x118b   : > { %v2153_v30 = vpop.f32.mrf.mxu0 }
0x118c   : > { %v2162_v31 = vmul.f32 0.35355338, %v2153_v30  ;;  %v2167_v32 = vsel %vm939_vm7, %v2163_v29, -inf }
0x118d   : > { %2168 = vmax.xlane.f32.xlu1 %v2167_v32 }
0x118e   : > { %v2164_v33 = vsel %vm935_vm8, %v2162_v31, -inf }
0x118f   : > { %2165 = vmax.xlane.f32.xlu0 %v2164_v33 }
0x1191   : > { %v3776_v34 = vpop.f32.mrf.mxu0 }
0x1192   : > { %v2366_v37 = vmul.f32 0.35355338, %v3776_v34 }
0x1193   : > { %v2356_v35 = vpop.f32.mrf.mxu0 }
0x1194   : > { %v2365_v36 = vmul.f32 0.35355338, %v2356_v35  ;;  %v2370_v39 = vsel %vm939_vm7, %v2366_v37, -inf }
0x1196   : > { %v2367_v38 = vsel %vm935_vm8, %v2365_v36, -inf }
0x1197   : > { %2368 = vmax.xlane.f32.xlu0 %v2367_v38 }
0x119b   : > { %2371 = vmax.xlane.f32.xlu0 %v2370_v39 }
0x119e   : > { %2188 = vrot.lane.b32.xlu1 %v4880_v14, %s4346_s13 }
0x11a2   : > { %2391 = vrot.lane.b32.xlu1 %v4880_v14, %s5221_s16 }
0x11a6   : > { %2389 = vrot.lane.b32.xlu1 %v4882_v16, %s5221_s16  ;;  %s3538_s16 = sshll.u32 %s4469_s0, 4  ;;  %s4357_s0 = smov [#allocation14]  }
0x11a7   : > { %s4256_s8 = sshll.u32 %s4357_s0, 4  ;;  %s4257_s8 = int_to_ptr.vmem [resolvable:$false] %s4256_s8 }
0x11a8   : > { %s4258_s15 = scalar_lea.vmem %s4257_s8, 32 }
0x11b1   : > { %2186 = vrot.lane.b32.xlu0 %v4882_v16, %s4346_s13  ;;  %s5224_s13 = smov 48  }
0x1216   : > { %v2169_v40 = vpop.xlane.xlu1 %2168 }
0x1217   : > { %v2171_v41 = vsub.f32 %v2163_v29, %v2169_v40 }
0x1218   : > { %v2166_v42 = vpop.xlane.xlu0 %2165 }
0x1219   : > { %v2174_v43 = vmul.f32 1.442695, %v2171_v41  ;;  %v2170_v27 = vsub.f32 %v2162_v31, %v2166_v42 }
0x121a   : > { %v2189_v44 = vpop.permute.xlu1 %2188 }
0x121b   : > { %4032 = vpow2.f32 %v2174_v43  ;;  %v2172_v45 = vmul.f32 1.442695, %v2170_v27  ;;  %3763 = vmatprep.subr.msk.mxu1 %vm749_vm4, %v2189_v44 }
0x121c   : > { %3764 = vmatpush3.msk.msra.mxu1 %vm749_vm4, %v2189_v44 }
0x121d   : > { %4034 = vpow2.f32 %v2172_v45 }
0x121e   : > { %v2392_v53 = vpop.permute.xlu1 %2391 }
0x1220   : > { %v2369_v46 = vpop.xlane.xlu0 %2368 }
0x1221   : > { %v2373_v57 = vsub.f32 %v2365_v36, %v2369_v46 }
0x1222   : > { %v2390_v21 = vpop.permute.xlu1 %2389 }
0x1223   : > { %v2375_v20 = vmul.f32 1.442695, %v2373_v57 }
0x1224   : > { %v2372_v25 = vpop.xlane.xlu0 %2371 }
0x1225   : > { %v2374_v47 = vsub.f32 %v2366_v37, %v2372_v25 }
0x1227   : > { %v2377_v48 = vmul.f32 1.442695, %v2374_v47 }
0x1228   : > { %v4033_v49 = vpop.eup %4032  ;;  %v2187_v50 = vpop.permute.xlu0 %2186 }
0x1229   : > { %4036 = vpow2.f32 %v2377_v48  ;;  %3765 = vmatprep.subr.mxu1 %v2187_v50  ;;  %v2179_v51 = vsel %vm939_vm7, %v4033_v49, 0.0 }
0x122a   : > { %v4035_v52 = vpop.eup %4034  ;;  %2180 = vadd.xlane.f32.xlu0 %v2179_v51  ;;  %3766 = vmatpush3.msra.mxu1 %v2187_v50  ;;  %4038 = vpow2.f32 %v2375_v20 }
0x122b   : > { %3777 = vmatprep.subr.msk.mxu1 %vm749_vm4, %v2392_v53  ;;  %v2176_v54 = vsel %vm935_vm8, %v4035_v52, 0.0 }
0x122c   : > { %2177 = vadd.xlane.f32.xlu1 %v2176_v54 }
0x1236   : > { %v4037_v55 = vpop.eup %4036 }
0x1237   : > { %v2382_v56 = vsel %vm939_vm7, %v4037_v55, 0.0  ;;  %v4039_v58 = vpop.eup %4038 }
0x1238   : > { %2383 = vadd.xlane.f32.xlu0 %v2382_v56  ;;  %v2379_v59 = vsel %vm935_vm8, %v4039_v58, 0.0 }
0x123d   : > { %2481 = vrot.lane.b32.xlu1 %v4882_v16, %s5222_s1 }
0x124e   : > { %2483 = vrot.lane.b32.xlu0 %v4880_v14, %s5222_s1 }
0x1252   : > { %2477 = vrot.lane.b32.xlu0 %v4882_v16, %s5223_s29 }
0x1261   : > { %2380 = vadd.xlane.f32.xlu1 %v2379_v59 }
0x1272   : > { %2479 = vrot.lane.b32.xlu1 %v4880_v14, %s5223_s29 }
0x12b3   : > { %v2181_v60 = vpop.xlane.xlu0 %2180 }
0x12b4   : > { %4040 = vrcp.f32 %v2181_v60 }
0x12b5   : > { %v2178_v61 = vpop.xlane.xlu1 %2177 }
0x12b6   : > { %4042 = vrcp.f32 %v2178_v61 }
0x12b9   : > { %v2482_v5 = vpop.permute.xlu1 %2481 }
0x12c1   : > { %v4041_v62 = vpop.eup %4040  ;;  %v2384_v1 = vpop.xlane.xlu0 %2383 }
0x12c2   : > { %v2185_v3 = vmul.f32 %v4041_v62, %v4033_v49  ;;  %4044 = vrcp.f32 %v2384_v1 }
0x12c3   : > { %v4043_v63 = vpop.eup %4042 }
0x12c4   : > { %v2184_v2 = vmul.f32 %v4043_v63, %v4035_v52 }
0x12c5   : > { %v2484_v4 = vpop.permute.xlu0 %2483 }
0x12c6   : > { %3767 = vmatprep.mubr.msk.f32.mxu1 %vm935_vm8, %v2184_v2 }
0x12c7   : > { %3768 = vmatmul.mubr.msk.f32.vlgmr.msra.gmra.mxu1 %vm935_vm8, %v2185_v3 }
0x12c8   : > { %3778 = vmatpush3.msk.msra.mxu1 %vm749_vm4, %v2392_v53 }
0x12c9   : > { %3779 = vmatprep.subr.mxu1 %v2390_v21  ;;  %v2478_v12 = vpop.permute.xlu0 %2477 }
0x12ca   : > { %3780 = vmatpush3.msra.mxu1 %v2390_v21 }
0x12cb   : > { %3784 = vmatprep.subr.msk.mxu1 %vm849_vm6, %v2484_v4 }
0x12cf   : > { %v4045_v7 = vpop.eup %4044 }
0x12d0   : > { %v2388_v24 = vmul.f32 %v4045_v7, %v4037_v55 }
0x12ea   : > { %v2381_v6 = vpop.xlane.xlu1 %2380 }
0x12eb   : > { %4046 = vrcp.f32 %v2381_v6 }
0x12ee   : > { %v2480_v13 = vpop.permute.xlu1 %2479 }
0x12f8   : > { %v4047_v8 = vpop.eup %4046 }
0x12f9   : > { %v2387_v9 = vmul.f32 %v4047_v8, %v4039_v58 }
0x12fb   : > { %3781 = vmatprep.mubr.msk.f32.mxu1 %vm935_vm8, %v2387_v9 }
0x12fc   : > { %3782 = vmatmul.mubr.msk.f32.vlgmr.msra.gmra.mxu1 %vm935_vm8, %v2388_v24 }
0x12fd   : > { %3785 = vmatpush3.xpose.msk.msra.mxu1 %vm849_vm6, %v2484_v4  ;;  %3788 = vmatprep.mubr.msk.f32.mxu1 %vm849_vm6, %v2478_v12  ;;  %v3518_v12 = vld [vmem:[%s5140_s7 + $0x30] sm:$0xff] }
0x12fe   : > { %3786 = vmatprep.subr.msk.mxu1 %vm849_vm6, %v2482_v5 }
0x1301   : > { %3787 = vmatpush3.xpose.msk.msra.mxu1 %vm849_vm6, %v2482_v5 }
0x1304   : > { %3789 = vmatmul.mubr.msk.f32.vlgmr.msra.gmra.mxu1 %vm849_vm6, %v2480_v13  ;;  %v3517_v13 = vld [vmem:[%s5140_s7 + $0x28] sm:$0xff] }
0x1387   : > { %v4948_v15 = vpop.f32.mrf.mxu1 }
0x1389   : > { %v4950_v17 = vpop.f32.mrf.mxu1 }
0x13bc   : > { %v4952_v18 = vpop.f32.mrf.mxu1 }
0x13be   : > { %v4954_v19 = vpop.f32.mrf.mxu1 }
0x13c4   : > { %v3790_v26 = vpop.f32.mrf.mxu1 }
0x13c5   : > { %v2569_v22 = vmul.f32 0.35355338, %v3790_v26 }
0x13c6   : > { %v2559_v23 = vpop.f32.mrf.mxu1 }
0x13c7   : > { %v2568_v28 = vmul.f32 0.35355338, %v2559_v23  ;;  %v2573_v29 = vsel %vm939_vm7, %v2569_v22, -inf }
0x13c8   : > { %2574 = vmax.xlane.f32.xlu1 %v2573_v29 }
0x13c9   : > { %v2570_v30 = vsel %vm935_vm8, %v2568_v28, -inf }
0x13ca   : > { %2571 = vmax.xlane.f32.xlu0 %v2570_v30 }
0x13d9   : > { %2594 = vrot.lane.b32.xlu1 %v4880_v14, %s5224_s13 }
0x13dd   : > { %2686 = vrot.lane.b32.xlu1 %v4880_v14, %s5225_s14 }
0x13e1   : > { %2684 = vrot.lane.b32.xlu1 %v4882_v16, %s5225_s14  ;;  %s5230_s14 = smov 24  }
0x13e5   : > { %2682 = vrot.lane.b32.xlu1 %v4880_v14, %s5226_s2 }
0x1451   : > { %v2575_v31 = vpop.xlane.xlu1 %2574 }
0x1452   : > { %v2577_v32 = vsub.f32 %v2569_v22, %v2575_v31 }
0x1453   : > { %v2572_v33 = vpop.xlane.xlu0 %2571 }
0x1454   : > { %v2580_v34 = vmul.f32 1.442695, %v2577_v32  ;;  %v2576_v35 = vsub.f32 %v2568_v28, %v2572_v33 }
0x1455   : > { %v2595_v36 = vpop.permute.xlu1 %2594 }
0x1456   : > { %4048 = vpow2.f32 %v2580_v34  ;;  %v2578_v37 = vmul.f32 1.442695, %v2576_v35  ;;  %3791 = vmatprep.subr.msk.mxu0 %vm749_vm4, %v2595_v36 }
0x1457   : > { %3792 = vmatpush3.msk.msra.mxu0 %vm749_vm4, %v2595_v36 }
0x1458   : > { %4050 = vpow2.f32 %v2578_v37 }
0x1459   : > { %v2687_v44 = vpop.permute.xlu1 %2686 }
0x145d   : > { %v2685_v49 = vpop.permute.xlu1 %2684 }
0x1461   : > { %v2683_v50 = vpop.permute.xlu1 %2682 }
0x1463   : > { %v4049_v38 = vpop.eup %4048 }
0x1464   : > { %v2585_v39 = vsel %vm939_vm7, %v4049_v38, 0.0 }
0x1465   : > { %v4051_v40 = vpop.eup %4050  ;;  %2586 = vadd.xlane.f32.xlu0 %v2585_v39 }
0x1466   : > { %v2582_v41 = vsel %vm935_vm8, %v4051_v40, 0.0 }
0x1469   : > { %2583 = vadd.xlane.f32.xlu0 %v2582_v41 }
0x147f   : > { %2592 = vrot.lane.b32.xlu0 %v4882_v16, %s5224_s13 }
0x1483   : > { %2680 = vrot.lane.b32.xlu0 %v4882_v16, %s5226_s2 }
0x14ee   : > { %v2587_v42 = vpop.xlane.xlu0 %2586 }
0x14ef   : > { %4052 = vrcp.f32 %v2587_v42 }
0x14f2   : > { %v2584_v43 = vpop.xlane.xlu0 %2583 }
0x14f3   : > { %4054 = vrcp.f32 %v2584_v43 }
0x14f6   : > { %v2593_v27 = vpop.permute.xlu0 %2592 }
0x14f7   : > { %3793 = vmatprep.subr.mxu0 %v2593_v27 }
0x14f8   : > { %3794 = vmatpush3.msra.mxu0 %v2593_v27 }
0x14f9   : > { %3798 = vmatprep.subr.msk.mxu0 %vm849_vm6, %v2687_v44 }
0x14fa   : > { %v2681_v48 = vpop.permute.xlu0 %2680 }
0x14fc   : > { %v4053_v45 = vpop.eup %4052 }
0x14fd   : > { %v2591_v47 = vmul.f32 %v4053_v45, %v4049_v38 }
0x1500   : > { %v4055_v46 = vpop.eup %4054 }
0x1501   : > { %v2590_v25 = vmul.f32 %v4055_v46, %v4051_v40 }
0x1503   : > { %3795 = vmatprep.mubr.msk.f32.mxu0 %vm935_vm8, %v2590_v25 }
0x1504   : > { %3796 = vmatmul.mubr.msk.f32.vlgmr.msra.gmra.mxu0 %vm935_vm8, %v2591_v47 }
0x1505   : > { %3799 = vmatpush3.xpose.msk.msra.mxu0 %vm849_vm6, %v2687_v44  ;;  %3802 = vmatprep.mubr.msk.f32.mxu0 %vm849_vm6, %v2681_v48 }
0x1506   : > { %3800 = vmatprep.subr.msk.mxu0 %vm849_vm6, %v2685_v49 }
0x1509   : > { %3801 = vmatpush3.xpose.msk.msra.mxu0 %vm849_vm6, %v2685_v49 }
0x150c   : > { %3803 = vmatmul.mubr.msk.f32.vlgmr.msra.gmra.mxu0 %vm849_vm6, %v2683_v50 }
0x15c4   : > { %v3797_v51 = vpop.f32.mrf.mxu0 }
0x15c6   : > { %v2671_v52 = vpop.f32.mrf.mxu0 }
0x15cc   : > { %v3804_v53 = vpop.f32.mrf.mxu0 }
0x15cd   : > { %v2772_v54 = vmul.f32 0.35355338, %v3804_v53 }
0x15ce   : > { %v2762_v55 = vpop.f32.mrf.mxu0 }
0x15cf   : > { %v2771_v56 = vmul.f32 0.35355338, %v2762_v55  ;;  %v2776_v57 = vsel %vm939_vm7, %v2772_v54, -inf }
0x15d0   : > { %2777 = vmax.xlane.f32.xlu1 %v2776_v57 }
0x15d1   : > { %v2773_v20 = vsel %vm935_vm8, %v2771_v56, -inf }
0x15d2   : > { %2774 = vmax.xlane.f32.xlu0 %v2773_v20 }
0x15e1   : > { %2797 = vrot.lane.b32.xlu1 %v4880_v14, %s5227_s3 }
0x15e5   : > { %2885 = vrot.lane.b32.xlu1 %v4954_v19, %s5228_s4 }
0x15e9   : > { %2887 = vrot.lane.b32.xlu1 %v4952_v18, %s5228_s4  ;;  %v3516_v18 = vld [vmem:[%s5140_s7 + $0x20] sm:$0xff]  ;;  %s5231_s4 = sld [smem:[#allocation30_spill]] }
0x15ed   : > { %2895 = vrot.lane.b32.xlu1 %v3797_v51, %s5229_s28 }
0x1659   : > { %v2778_v58 = vpop.xlane.xlu1 %2777 }
0x165a   : > { %v2780_v59 = vsub.f32 %v2772_v54, %v2778_v58 }
0x165b   : > { %v2775_v21 = vpop.xlane.xlu0 %2774 }
0x165c   : > { %v2783_v60 = vmul.f32 1.442695, %v2780_v59  ;;  %v2779_v61 = vsub.f32 %v2771_v56, %v2775_v21  ;;  %v3530_v59 = vld [vmem:[%s5144_s11 + $0x38] sm:$0xff] }
0x165d   : > { %v2798_v62 = vpop.permute.xlu1 %2797  ;;  %3823 = vmatprep.subr.mxu0 %v3530_v59 }
0x165e   : > { %4056 = vpow2.f32 %v2783_v60  ;;  %v2781_v63 = vmul.f32 1.442695, %v2779_v61  ;;  %3805 = vmatprep.subr.msk.mxu1 %vm749_vm4, %v2798_v62  ;;  %3824 = vmatpush3.msra.mxu0 %v3530_v59  ;;  %v3529_v60 = vld [vmem:[%s5144_s11 + $0x30] sm:$0xff] }
0x165f   : > { %3806 = vmatpush3.msk.msra.mxu1 %vm749_vm4, %v2798_v62  ;;  %3825 = vmatprep.subr.mxu0 %v3529_v60  ;;  %v3528_v62 = vld [vmem:[%s5144_s11 + $0x28] sm:$0xff]  ;;  %v3536_v59 = vld [vmem:[%s5220_s17 + $0x10] sm:$0xff] }
0x1660   : > { %4058 = vpow2.f32 %v2781_v63  ;;  %3826 = vmatpush3.msra.mxu0 %v3529_v60 }
0x1661   : > { %v2886_v22 = vpop.permute.xlu1 %2885  ;;  %3827 = vmatprep.subr.mxu0 %v3528_v62 }
0x1662   : > { %v2907_v30 = vsel %vm849_vm6, %v4950_v17, %v2886_v22  ;;  %v3520_v17 = vld [vmem:[#allocation13 + $0x1] ss:$0 sm:$0xff]  ;;  %3828 = vmatpush3.msra.mxu0 %v3528_v62 }
0x1665   : > { %v2888_v23 = vpop.permute.xlu1 %2887 }
0x1666   : > { %v2908_v32 = vsel %vm849_vm6, %v4948_v15, %v2888_v23 }
0x1669   : > { %v2896_v28 = vpop.permute.xlu1 %2895 }
0x166a   : > { %v2910_v35 = vsel %vm1682_vm9, %v2908_v32, %v2896_v28 }
0x166b   : > { %v4057_v14 = vpop.eup %4056 }
0x166c   : > { %v2788_v1 = vsel %vm939_vm7, %v4057_v14, 0.0 }
0x166d   : > { %v4059_v2 = vpop.eup %4058  ;;  %2789 = vadd.xlane.f32.xlu0 %v2788_v1 }
0x166e   : > { %v2785_v3 = vsel %vm935_vm8, %v4059_v2, 0.0 }
0x1671   : > { %2786 = vadd.xlane.f32.xlu0 %v2785_v3 }
0x1687   : > { %2795 = vrot.lane.b32.xlu0 %v4882_v16, %s5227_s3  ;;  %v3519_v16 = vld [vmem:[%s5140_s7 + $0x38] sm:$0xff] }
0x168b   : > { %2893 = vrot.lane.b32.xlu0 %v2671_v52, %s5229_s28  ;;  %s3287_s28 = scalar_lea.sflag [#allocation4], %s4619_s6 }
0x16f6   : > { %v2790_v4 = vpop.xlane.xlu0 %2789 }
0x16f7   : > { %4060 = vrcp.f32 %v2790_v4  ;;  %v3523_v4 = vld [vmem:[%s5142_s9 + $0x10] sm:$0xff] }
0x16fa   : > { %v2787_v5 = vpop.xlane.xlu0 %2786 }
0x16fb   : > { %4062 = vrcp.f32 %v2787_v5  ;;  %v3524_v5 = vld [vmem:[%s5142_s9 + $0x18] sm:$0x1] }
0x16fe   : > { %v2796_v6 = vpop.permute.xlu0 %2795 }
0x16ff   : > { %3807 = vmatprep.subr.mxu1 %v2796_v6 }
0x1700   : > { %3808 = vmatpush3.msra.mxu1 %v2796_v6 }
0x1701   : > { %3812 = vmatprep.subr.mxu1 %v3519_v16 }
0x1702   : > { %v2894_v29 = vpop.permute.xlu0 %2893 }
0x1703   : > { %v2909_v33 = vsel %vm1682_vm9, %v2907_v30, %v2894_v29 }
0x1704   : > { %v4061_v7 = vpop.eup %4060 }
0x1705   : > { %v2794_v24 = vmul.f32 %v4061_v7, %v4057_v14  ;;  %v3527_v14 = vld [vmem:[%s5144_s11 + $0x20] sm:$0xff] }
0x1706   : > { %3829 = vmatprep.subr.mxu0 %v3527_v14 }
0x1707   : > { %3830 = vmatpush3.msra.mxu0 %v3527_v14 }
0x1708   : > { %v4063_v8 = vpop.eup %4062 }
0x1709   : > { %v2793_v9 = vmul.f32 %v4063_v8, %v4059_v2 }
0x170b   : > { %3809 = vmatprep.mubr.msk.f32.mxu1 %vm935_vm8, %v2793_v9  ;;  %v3525_v9 = vld [vmem:[%s5143_s10 + $0x10] sm:$0xff] }
0x170c   : > { %3810 = vmatmul.mubr.msk.f32.vlgmr.msra.gmra.mxu1 %vm935_vm8, %v2794_v24  ;;  %v3526_v24 = vld [vmem:[%s5143_s10 + $0x18] sm:$0x1] }
0x170d   : > { %3813 = vmatpush3.msra.mxu1 %v3519_v16 }
0x170e   : > { %3814 = vmatprep.subr.mxu1 %v3518_v12 }
0x170f   : > { %3815 = vmatpush3.msra.mxu1 %v3518_v12 }
0x1710   : > { %3816 = vmatprep.subr.mxu1 %v3517_v13 }
0x1711   : > { %3817 = vmatpush3.msra.mxu1 %v3517_v13 }
0x1712   : > { %3818 = vmatprep.subr.mxu1 %v3516_v18 }
0x1713   : > { %3819 = vmatpush3.msra.mxu1 %v3516_v18 }
0x1714   : > { %3834 = vmatprep.subr.mxu1 %v4341_v0 }
0x17cc   : > { %v3811_v19 = vpop.f32.mrf.mxu1 }
0x17cd   : > { %2903 = vrot.lane.b32.xlu1 %v3811_v19, %s5230_s14  ;;  %v3532_v19 = vld [vmem:[%s5145_s12 + $0x1] ss:$0 sm:$0xff] }
0x17ce   : > { %v2874_v26 = vpop.f32.mrf.mxu1 }
0x17cf   : > { %2901 = vrot.lane.b32.xlu0 %v2874_v26, %s5230_s14 }
0x183f   : > { %v2904_v31 = vpop.permute.xlu1 %2903 }
0x1840   : > { %v2912_v37 = vsel %vm1685_vm10, %v2910_v35, %v2904_v31 }
0x1841   : > { %v2902_v34 = vpop.permute.xlu0 %2901 }
0x1842   : > { %v2911_v36 = vsel %vm1685_vm10, %v2909_v33, %v2902_v34 }
0x1843   : > { %3820 = vmatprep.mubr.msk.f32.mxu1 %vm762_vm5, %v2911_v36 }
0x1844   : > { %3821 = vmatmul.mubr.msk.f32.vlgmr.msra.gmra.mxu1 %vm762_vm5, %v2912_v37 }
0x1845   : > { %3842 = vmatprep.mubr.msk.f32.mxu1 %vm4342_vm0, %v4341_v0 }
0x1904   : > { %v3822_v38 = vpop.f32.mrf.mxu1 }
0x1905   : > { %v3004_v39 = vadd.f32 %v3822_v38, %v3520_v17 }
0x1906   : > { %v2998_v15 = vpop.f32.mrf.mxu1 }
0x1907   : > { %v3008_v40 = vadd.f32 %v3004_v39, %v4874_v11  ;;  %v2999_v41 = vadd.f32 %v3520_v17, %v2998_v15 }
0x1909   : > { %v3007_v42 = vadd.f32 %v2999_v41, %v4872_v10  ;;  %v3016_v27 = vsel %vm1787_vm11, %v3008_v40, 0.0 }
0x190b   : > { %v3015_v43 = vsel %vm762_vm5, %v3007_v42, 0.0 }
0x190c   : > { %v3017_v44 = vadd.f32 %v3016_v27, %v3015_v43 }
0x190e   : > { %3018 = vadd.xlane.f32.xlu0 %v3017_v44 }
0x1997   : > { %v3019_v45 = vpop.xlane.xlu0 %3018 }
0x1998   : > { %v3020_v46 = vrot.slane %v3019_v45, 4 }
0x199a   : > { %v3021_v25 = vadd.f32 %v3020_v46, %v3019_v45 }
0x199c   : > { %v3022_v47 = vrot.slane %v3021_v25, 2 }
0x199e   : > { %v3023_v48 = vadd.f32 %v3022_v47, %v3021_v25 }
0x19a0   : > { %v3024_v49 = vrot.slane %v3023_v48, 1 }
0x19a2   : > { %v3025_v50 = vadd.f32 %v3024_v49, %v3023_v48 }
0x19a4   : > { %3857 = vpush %v3025_v50  ;;  %v3209_v50 = vld [vmem:[%s5231_s4 + $0x18] sm:$0xff] }
0x19a5   : > { %3835 = vmatpush3.msra.mxu1 %v3209_v50 }
0x19a6   : > { %3836 = vmatprep.subr.mxu1 %v4341_v0 }
0x19d5   : > { %s3858_s2 = spop %3857 }
0x19d6   : > { %s3029_s3 = smul.f32 0.0034722222, %s3858_s2 }
0x19d8   : > { %v3030_v11 = vstv %s3029_s3 }
0x19d9   : > { %v3031_v51 = vsub.f32 %v3007_v42, %v3030_v11  ;;  %v3032_v52 = vsub.f32 %v3008_v40, %v3030_v11 }
0x19db   : > { %v3033_v10 = vmul.f32 %v3031_v51, %v3031_v51  ;;  %v3034_v53 = vmul.f32 %v3032_v52, %v3032_v52 }
0x19dd   : > { %v3035_v54 = vsel %vm762_vm5, %v3033_v10, 0.0  ;;  %v3036_v55 = vsel %vm1787_vm11, %v3034_v53, 0.0  ;;  %v3207_v10 = vld [vmem:[%s5231_s4 + $0x8] sm:$0xff] }
0x19de   : > { %v3037_v56 = vadd.f32 %v3036_v55, %v3035_v54  ;;  %v3206_v54 = vld [vmem:[%s5231_s4] sm:$0xff] }
0x19e0   : > { %3038 = vadd.xlane.f32.xlu1 %v3037_v56 }
0x1a69   : > { %v3039_v57 = vpop.xlane.xlu1 %3038 }
0x1a6a   : > { %v3040_v20 = vrot.slane %v3039_v57, 4 }
0x1a6c   : > { %v3041_v58 = vadd.f32 %v3040_v20, %v3039_v57 }
0x1a6e   : > { %v3042_v21 = vrot.slane %v3041_v58, 2 }
0x1a70   : > { %v3043_v61 = vadd.f32 %v3042_v21, %v3041_v58 }
0x1a72   : > { %v3044_v63 = vrot.slane %v3043_v61, 1 }
0x1a74   : > { %v3045_v1 = vadd.f32 %v3044_v63, %v3043_v61  ;;  %v3210_v61 = vld [vmem:[%s5232_s18] sm:$0x1] }
0x1a76   : > { %3859 = vpush %v3045_v1 }
0x1aa7   : > { %s3860_s29 = spop %3859 }
0x1aa8   : > { %s3049_s13 = smul.f32 0.0034722222, %s3860_s29 }
0x1aaa   : > { %s3050_s14 = sadd.f32 1e-05, %s3049_s13 }
0x1aac   : > { %v3051_v2 = vstv %s3050_s14 }
0x1aad   : > { %4064 = vrsqrt.f32 %v3051_v2 }
0x1aba   : > { %v4065_v3 = vpop.eup %4064 }
0x1abb   : > { %3861 = vpush %v4065_v3 }
0x1aec   : > { %s3862_s2 = spop %3861 }
0x1aed   : > { %v3054_v6 = vstv %s3862_s2  ;;  %s5233_s2 = sld [smem:[#allocation32_spill]] }
0x1aee   : > { %v3055_v7 = vmul.f32 %v3054_v6, %v3031_v51  ;;  %v3056_v8 = vmul.f32 %v3054_v6, %v3032_v52  ;;  %v3208_v51 = vld [vmem:[%s5231_s4 + $0x10] sm:$0xff] }
0x1aef   : > { %3837 = vmatpush3.msra.mxu1 %v3208_v51 }
0x1af0   : > { %v3057_v16 = vmul.f32 %v3523_v4, %v3055_v7  ;;  %v3058_v12 = vmul.f32 %v3524_v5, %v3056_v8  ;;  %3838 = vmatprep.subr.mxu1 %v4341_v0 }
0x1af1   : > { %3839 = vmatpush3.msra.mxu1 %v3207_v10 }
0x1af2   : > { %v3059_v13 = vadd.f32 %v3525_v9, %v3057_v16  ;;  %v3060_v18 = vadd.f32 %v3526_v24, %v3058_v12  ;;  %3840 = vmatprep.subr.mxu1 %v4341_v0  ;;  %v3535_v0 = vld [vmem:[%s5219_s30 + $0x10] sm:$0xff] }
0x1af3   : > { %3841 = vmatpush3.msra.mxu1 %v3206_v54  ;;  %s5096_s3 = scalar_lea.hbm %s5233_s2, %s3538_s16 }
0x1af4   : > { %3831 = vmatprep.mubr.msk.f32.mxu0 %vm762_vm5, %v3059_v13 }
0x1af5   : > { %3832 = vmatmul.mubr.msk.f32.vlgmr.msra.gmra.mxu0 %vm762_vm5, %v3060_v18 }
0x1bb5   : > { %v3833_v26 = vpop.f32.mrf.mxu0 }
0x1bb6   : > { %v3152_v22 = vadd.f32 %v3833_v26, %v3532_v19 }
0x1bb7   : > { %v3146_v23 = vpop.f32.mrf.mxu0 }
0x1bb8   : > { %v3156_v28 = vmax.f32 %v3152_v22, 0.0  ;;  %v3147_v29 = vadd.f32 %v3532_v19, %v3146_v23 }
0x1bba   : > { %v3158_v30 = vadd.f32 %v3156_v28, %v3060_v18  ;;  %v3155_v31 = vmax.f32 %v3147_v29, 0.0 }
0x1bbc   : > { %v3157_v32 = vadd.f32 %v3155_v31, %v3059_v13  ;;  %v3164_v34 = vsel %vm1787_vm11, %v3158_v30, 0.0 }
0x1bbe   : > { %v3163_v33 = vsel %vm762_vm5, %v3157_v32, 0.0 }
0x1bbf   : > { %v3165_v35 = vadd.f32 %v3164_v34, %v3163_v33 }
0x1bc1   : > { %3166 = vadd.xlane.f32.xlu0 %v3165_v35 }
0x1c4a   : > { %v3167_v36 = vpop.xlane.xlu0 %3166 }
0x1c4b   : > { %v3168_v37 = vrot.slane %v3167_v36, 4 }
0x1c4d   : > { %v3169_v17 = vadd.f32 %v3168_v37, %v3167_v36 }
0x1c4f   : > { %v3170_v38 = vrot.slane %v3169_v17, 2 }
0x1c51   : > { %v3171_v39 = vadd.f32 %v3170_v38, %v3169_v17 }
0x1c53   : > { %v3172_v15 = vrot.slane %v3171_v39, 1 }
0x1c55   : > { %v3173_v40 = vadd.f32 %v3172_v15, %v3171_v39 }
0x1c57   : > { %3863 = vpush %v3173_v40 }
0x1c88   : > { %s3864_s13 = spop %3863 }
0x1c89   : > { %s3177_s14 = smul.f32 0.0034722222, %s3864_s13 }
0x1c8b   : > { %v3178_v41 = vstv %s3177_s14 }
0x1c8c   : > { %v3179_v42 = vsub.f32 %v3157_v32, %v3178_v41  ;;  %v3180_v43 = vsub.f32 %v3158_v30, %v3178_v41 }
0x1c8e   : > { %v3181_v27 = vmul.f32 %v3179_v42, %v3179_v42  ;;  %v3182_v44 = vmul.f32 %v3180_v43, %v3180_v43 }
0x1c90   : > { %v3183_v45 = vsel %vm762_vm5, %v3181_v27, 0.0  ;;  %v3184_v46 = vsel %vm1787_vm11, %v3182_v44, 0.0 }
0x1c91   : > { %v3185_v25 = vadd.f32 %v3184_v46, %v3183_v45 }
0x1c93   : > { %3186 = vadd.xlane.f32.xlu0 %v3185_v25 }
0x1d1c   : > { %v3187_v47 = vpop.xlane.xlu0 %3186 }
0x1d1d   : > { %v3188_v48 = vrot.slane %v3187_v47, 4 }
0x1d1f   : > { %v3189_v49 = vadd.f32 %v3188_v48, %v3187_v47 }
0x1d21   : > { %v3190_v11 = vrot.slane %v3189_v49, 2 }
0x1d23   : > { %v3191_v52 = vadd.f32 %v3190_v11, %v3189_v49 }
0x1d25   : > { %v3192_v53 = vrot.slane %v3191_v52, 1 }
0x1d27   : > { %v3193_v55 = vadd.f32 %v3192_v53, %v3191_v52 }
0x1d29   : > { %3865 = vpush %v3193_v55 }
0x1d5a   : > { %s3866_s1 = spop %3865 }
0x1d5b   : > { %s3197_s29 = smul.f32 0.0034722222, %s3866_s1  ;;  %s645_s1 = scalar_lea.vmem [#allocation14], %s4619_s6 }
0x1d5d   : > { %s3198_s13 = sadd.f32 1e-05, %s3197_s29  ;;  %s3299_s29 = sshll.u32 %s645_s1, 4  ;;  %s3300_s29 = int_to_ptr.vmem [resolvable:$true] %s3299_s29 }
0x1d5e   : > { %s4252_s21 = scalar_lea.vmem %s3300_s29, 16  ;;  %p4259_p5 = scmp.lt.s32.totalorder %s3300_s29, %s4257_s8 }
0x1d5f   : > { %v3199_v56 = vstv %s3198_s13  ;;  %p4253_p12 = scmp.ne.s32.totalorder %s3300_s29, %s4252_s21  ;;  %p4260_p9 = scmp.lt.s32.totalorder %s4258_s15, %s4252_s21 }
0x1d60   : > { %4066 = vrsqrt.f32 %v3199_v56 }
0x1d61   : > { %p4254_p0 = pnand %p4253_p12, %p5234_p13  ;;  %p4261_p8 = por %p4260_p9, %p4259_p5 }
0x1d63   : > { %p4255_p4 = pneg %p4254_p0 }
0x1d65   : > { %p4262_p7 = pnand %p4261_p8, %p4255_p4 }
0x1d6d   : > { %v4067_v57 = vpop.eup %4066 }
0x1d6e   : > { %3867 = vpush %v4067_v57 }
0x1d9f   : > { %s3868_s14 = spop %3867 }
0x1da0   : > { %v3202_v20 = vstv %s3868_s14 }
0x1da1   : > { %v3203_v58 = vmul.f32 %v3202_v20, %v3179_v42 }
0x1da3   : > { %v3204_v21 = vmul.f32 %v3535_v0, %v3203_v58 }
0x1da5   : > { %v3205_v60 = vadd.f32 %v3536_v59, %v3204_v21 }
0x1da7   : > { %3843 = vmatmul.mubr.msk.f32.vlgmr.msra.gmra.mxu1 %vm762_vm5, %v3205_v60 }
0x1e67   : > { %v3280_v62 = vpop.f32.mrf.mxu1 }
0x1e68   : > { %v3281_v63 = vadd.f32 %v3280_v62, %v3210_v61 }
0x1e69   : > { %v3844_v14 = vpop.f32.mrf.mxu1 }
0x1e6a   : > { %3285 = vst.msk [vmem:[%s645_s1] sm:$0x1] %vm3284_vm12, %v3281_v63 }
0x1e6b   : > { %4265 = shalt.err (!%p4262_p7)
}
0x1e6c   : > { %s4266_s18 = scalar_lea.hbm %s5096_s3, 16  ;;  %s4270_s1 = scalar_lea.hbm %s5233_s2, 32 }
0x1e6d   : > { %p4267_p6 = scmp.ne.s32.totalorder %s5096_s3, %s4266_s18  ;;  %p4271_p2 = scmp.lt.s32.totalorder %s5096_s3, %s5233_s2 }
0x1e6e   : > { %p4272_p10 = scmp.lt.s32.totalorder %s4270_s1, %s4266_s18 }
0x1e6f   : > { %p4268_p1 = pnand %p4267_p6, %p5234_p13 }
0x1e70   : > { %p4273_p11 = por %p4272_p10, %p4271_p2 }
0x1e71   : > { %p4269_p3 = pneg %p4268_p1 }
0x1e73   : > { %p4274_p12 = pnand %p4273_p11, %p4269_p3 }
0x1e75   : > { %4277 = shalt.err (!%p4274_p12)
}
0x1e76   : > { %3895 = dma.vmem_to_hbm [thread:$0]  (%p5234_p13), %s3300_s29, 16, %s5096_s3, %s3287_s28  }
0x1e77 PF: > { %s3311_s21 = sand.u32 1, %s4316_s24   ;;  %p5235_p0 = scmp.ne.s32.totalorder %s5208_s19, 0 }
0x1e78   : > { %p5236_p4 = scmp.ge.s32.totalorder %s4328_s27, 2  ;;  %s3312_s0 = scalar_lea.sflag [#allocation4], %s3311_s21 }
0x1e7a   : > { %p3921_p5 = pnand %p5236_p4, %p5235_p0 }
0x1e7c   : > { %p3922_p9 = pneg %p3921_p5 }
0x1e7e   : > { %4311 = dma.done.wait (%p3922_p9), %s3312_s0, 16  }
0x1e7f   : > { %4313 = vsyncadd (%p3922_p9), %s3312_s0, 4294967280  ;;  %s5237_s8 = sld [smem:[#allocation20_spill]]  ;;  %p33_p8 = scmp.ge.s32.totalorder %s4556_s22, 4  }
0x1e80   : > { %s5238_s24 = smov %s4320_s25  ;;  %s5239_s25 = smov %s4324_s26 }
0x1e81   : > { %s5241_s27 = smov %s4556_s22  ;;  %35 = sbr.rel (!%p33_p8) target bundleno = 21 (0x15), region = 167 }
0x1e85   : > { %s5240_s26 = smov %s5237_s8 }
0x1e86   :  { %3316 = vsyncpa [#allocation3], 1 }
0x1e87   :  { %3318 = vsyncpa [#allocation3 + $0x1], 1 }
0x1e88   :  { %3319 = vsyncpa [#allocation6], 1 }
0x1e89   :  { %3320 = vsyncpa [#allocation9], 1 }
0x1e8a   :  { %3321 = vsyncpa [#allocation12], 1 }
0x1e8b   :  { %3322 = vsyncpa [#allocation4], 1 }
0x1e8c   :  { %3324 = vsyncpa [#allocation4 + $0x1], 1 }

</bundles_post_ra>
